<compile_context>
chip_gen: v7x
topology: tpu7x:2x2x1
jax: 0.10.0
libtpu: 0.0.40
codegen_flags: <defaults>
</compile_context>

<pallas_src>
import jax
import jax.numpy as jnp
from jax import lax
from jax.experimental import pallas as pl
from jax.experimental.pallas import tpu as pltpu


# ----------------------------------------------------------------------------
# Pallas kernel: one (channel-tile, box) per grid step.  The batch slice of
# `image` is gathered via a scalar-prefetched box_ind used in the index_map.
# ----------------------------------------------------------------------------
def _make_kernel(fused_z, add_extrap):
    def kernel(box_ind_ref, img_ref, wyx_ref, wz_ref, *rest):
        del box_ind_ref  # consumed only by the image BlockSpec index_map (batch gather)
        if add_extrap:
            eadd_ref, out_ref = rest
        else:
            (out_ref,) = rest

        cd, D = wz_ref.shape
        rows, _ = img_ref.shape            # rows = Cb * D (merged in the wrapper)
        Cb = rows // D
        Fp = wyx_ref.shape[-1]             # lane-padded ch*cw

        # --- fused Y+X interpolation on the MXU: (Cb*D, H*W) @ (H*W, Fp) --------
        t1 = jnp.dot(img_ref[...], wyx_ref[...],
                     preferred_element_type=jnp.float32)           # (Cb*D, Fp) f32
        t1 = t1.reshape(Cb, D, Fp)

        if fused_z:
            # --- Z pass as ONE contraction: (cd, D) . (Cb, D, Fp) -> (cd, Cb, Fp)
            t2 = lax.dot_general(wz_ref[...], t1,
                                 dimension_numbers=(((1,), (1,)), ((), ())),
                                 preferred_element_type=jnp.float32)
            if add_extrap:
                t2 = t2 + eadd_ref[...][:, None, :]                # (cd, 1, Fp)
        else:
            # Fallback: previously-validated batched contraction over the C tile.
            wz_b = jnp.broadcast_to(wz_ref[...][None], (Cb, cd, D))
            t2 = lax.dot_general(wz_b, t1,
                                 dimension_numbers=(((2,), (1,)), ((0,), (0,))),
                                 preferred_element_type=jnp.float32)  # (Cb, cd, Fp)
            if add_extrap:
                t2 = t2 + eadd_ref[...][None, :, :]

        # Invalid positions already got 0 from the zeroed weight rows; extrapolation
        # (if any) was added above.
        out_ref[...] = t2.astype(out_ref.dtype)

    return kernel


# ----------------------------------------------------------------------------
# Glue: per-axis sample coordinates / validity / interpolation weight matrices.
# ----------------------------------------------------------------------------
def _coords_1d(c1, c2, S, R):
    """Sample coordinates (N, R) along one axis, and their validity (N, R)."""
    if R > 1:
        scale = (c2 - c1) * (S - 1) / (R - 1)                         # (N,)
        coord = c1[:, None] * (S - 1) + (
            jnp.arange(R, dtype=jnp.float32)[None, :] * scale[:, None])
    else:
        coord = (0.5 * (c1 + c2) * (S - 1))[:, None]
    valid = (coord >= 0.0) & (coord <= S - 1)
    return coord, valid


def _axis_weights(c1, c2, S, R):
    """Linear interpolation weight matrix (N, R, S) and validity mask (N, R)."""
    coord, valid = _coords_1d(c1, c2, S, R)
    lo = jnp.floor(coord)
    frac = coord - lo
    lo_i = jnp.clip(lo.astype(jnp.int32), 0, S - 1)
    hi_i = jnp.clip(lo_i + 1, 0, S - 1)
    w = (jax.nn.one_hot(lo_i, S, dtype=jnp.float32) * (1.0 - frac)[..., None]
         + jax.nn.one_hot(hi_i, S, dtype=jnp.float32) * frac[..., None])
    return w, valid


def _vmem_capacity_bytes():
    """Physical VMEM per TensorCore (generation-aware); conservative fallback."""
    try:
        info = pltpu.get_tpu_info()
        for name in ("vmem_capacity_bytes", "vmem_size_bytes", "vmem_bytes"):
            v = getattr(info, name, None)
            if v:
                return int(v)
    except Exception:
        pass
    return 64 << 20  # v7x per-TC size; safe lower bound everywhere


def _pick_c_block(C, D, HW, cd, F_pad, img_item, w_item, out_item, budget_bytes):
    """Largest lowering-friendly channel tile whose pipelined residency fits VMEM."""
    def residency(cb):
        return (2 * cb * D * HW * img_item          # image tile, double-buffered
                + 2 * HW * F_pad * w_item           # fused Y/X weights
                + 2 * cd * D * 4                    # wz
                + 2 * cd * F_pad * 4                # extrapolation term
                + 2 * cd * cb * F_pad * out_item    # output tile
                + cb * D * F_pad * 4)               # f32 intermediate t1
    # c_block must be C itself or a multiple of 8 (keeps every BlockSpec's
    # second-minor dim either full-extent or 8-aligned).
    cands = sorted({d for d in range(1, C + 1)
                    if C % d == 0 and (d == C or d % 8 == 0)})
    best = cands[0]
    for d in cands:
        if residency(d) <= budget_bytes:
            best = d
    return best


# ----------------------------------------------------------------------------
# Wrapper = the forward of CropAndResize3d.
# ----------------------------------------------------------------------------
def crop_and_resize_3d(image, boxes, box_ind, crop_height, crop_width,
                       crop_depth, extrapolation_value=0.0, use_bf16=True,
                       c_block=None):
    B, C, D, H, W = image.shape
    N = boxes.shape[0]
    cd, ch, cw = crop_depth, crop_height, crop_width
    HW = H * W
    F = ch * cw
    F_pad = ((F + 127) // 128) * 128          # lane-dense stores + full MXU lanes
    out_dtype = image.dtype
    compute_dtype = jnp.bfloat16 if use_bf16 else image.dtype
    img_item = jnp.dtype(compute_dtype).itemsize
    out_item = jnp.dtype(out_dtype).itemsize

    # Group boxes by batch index so consecutive grid steps (box axis innermost)
    # can reuse the same image-slice DMA; undo the permutation on the output.
    order = jnp.argsort(box_ind)
    inv_order = jnp.argsort(order)
    boxes_s = boxes[order].astype(jnp.float32)
    box_ind_s = box_ind[order].astype(jnp.int32)

    y1, x1, y2, x2, z1, z2 = [boxes_s[:, i] for i in range(6)]
    wz, vz = _axis_weights(z1, z2, D, cd)       # (N, cd, D), (N, cd)
    wy, vy = _axis_weights(y1, y2, H, ch)       # (N, ch, H), (N, ch)
    wx, vx = _axis_weights(x1, x2, W, cw)       # (N, cw, W), (N, cw)

    # Zero the weight rows of invalid output positions -> interp contributes 0 there.
    wz_m = (wz * vz[..., None].astype(jnp.float32)).astype(jnp.float32)
    wy_m = wy * vy[..., None].astype(jnp.float32)
    wx_m = wx * vx[..., None].astype(jnp.float32)

    # Fused, lane-padded Y+X weight matrix: (N, H*W, F_pad).
    wyx = jnp.einsum('nyh,nxw->nhwyx', wy_m, wx_m).reshape(N, HW, F)
    if F_pad != F:
        wyx = jnp.pad(wyx, ((0, 0), (0, 0), (0, F_pad - F)))
    wyx = wyx.astype(compute_dtype)

    add_extrap = float(extrapolation_value) != 0.0
    if add_extrap:
        mask = (vz[:, :, None, None] & vy[:, None, :, None] & vx[:, None, None, :])
        eadd = (float(extrapolation_value)
                * (1.0 - mask.astype(jnp.float32))).reshape(N, cd, F)
        if F_pad != F:
            eadd = jnp.pad(eadd, ((0, 0), (0, 0), (0, F_pad - F)))

    # Lane-dense image layout with D folded into the row dim: (B, C*D, H*W).
    image_r = image.reshape(B, C * D, HW).astype(compute_dtype)

    # Generation-aware VMEM budgeting (64 MiB/TC v7x, 128 MiB v5e/v6e).
    cap = _vmem_capacity_bytes()
    if c_block is None:
        c_block = _pick_c_block(C, D, HW, cd, F_pad, img_item, img_item, out_item,
                                budget_bytes=int(cap * 0.55))
    assert C % c_block == 0
    n_c = C // c_block
    vmem_limit = max(32 << 20, min(int(cap * 0.8), 100 << 20))

    # Grid: channel tiles outer, boxes inner -> the box axis iterates fastest and
    # consecutive boxes sharing box_ind keep the same image block (DMA skipped).
    grid = (n_c, N)
    in_specs = [
        pl.BlockSpec((None, c_block * D, HW), lambda c, n, bi: (bi[n], c, 0)),
        pl.BlockSpec((None, HW, F_pad),       lambda c, n, bi: (n, 0, 0)),
        pl.BlockSpec((None, cd, D),           lambda c, n, bi: (n, 0, 0)),
    ]
    inputs = [box_ind_s, image_r, wyx, wz_m]
    if add_extrap:
        in_specs.append(pl.BlockSpec((None, cd, F_pad), lambda c, n, bi: (n, 0, 0)))
        inputs.append(eadd)

    flops_per_box = 2.0 * C * D * HW * F_pad + 2.0 * cd * D * C * F_pad
    bytes_per_box = (C * D * HW * img_item
                     + HW * F_pad * img_item
                     + cd * D * 4 + (cd * F_pad * 4 if add_extrap else 0)
                     + cd * C * F_pad * out_item)
    cost = pl.CostEstimate(flops=int(N * flops_per_box),
                           transcendentals=0,
                           bytes_accessed=int(N * bytes_per_box))

    def run(fused_z):
        kernel = _make_kernel(fused_z, add_extrap)
        if fused_z:
            out_shape = jax.ShapeDtypeStruct((N, cd, C, F_pad), out_dtype)
            out_spec = pl.BlockSpec((None, cd, c_block, F_pad),
                                    lambda c, n, bi: (n, 0, c, 0))
        else:
            out_shape = jax.ShapeDtypeStruct((N, C, cd, F_pad), out_dtype)
            out_spec = pl.BlockSpec((None, c_block, cd, F_pad),
                                    lambda c, n, bi: (n, c, 0, 0))
        out = pl.pallas_call(
            kernel,
            out_shape=out_shape,
            grid_spec=pltpu.PrefetchScalarGridSpec(
                num_scalar_prefetch=1, grid=grid,
                in_specs=in_specs, out_specs=out_spec),
            compiler_params=pltpu.CompilerParams(
                dimension_semantics=("parallel", "parallel"),
                vmem_limit_bytes=vmem_limit),
            cost_estimate=cost,
        )(*inputs)
        out = jax.block_until_ready(out)          # surface compile/run errors here
        out = out[inv_order][..., :F]             # undo sort, drop lane padding
        if fused_z:
            out = jnp.transpose(out, (0, 2, 1, 3))   # (N, cd, C, F) -> (N, C, cd, F)
        return out.reshape(N, C, cd, ch, cw)

    try:
        return run(fused_z=True)
    except Exception:
        # TODO(synk): rank-3 (no-batch) dot_general not supported by this Mosaic
        # build; fall back to the validated per-channel batched contraction.
        return run(fused_z=False)


# ----------------------------------------------------------------------------
# Pure-JAX gather-based reference (for correctness check only).
# ----------------------------------------------------------------------------
def crop_and_resize_3d_ref(image, boxes, box_ind, crop_height, crop_width,
                           crop_depth, extrapolation_value=0.0):
    B, C, D, H, W = image.shape
    cd, ch, cw = crop_depth, crop_height, crop_width
    y1, x1, y2, x2, z1, z2 = [boxes[:, i] for i in range(6)]
    zc, vz = _coords_1d(z1, z2, D, cd)
    yc, vy = _coords_1d(y1, y2, H, ch)
    xc, vx = _coords_1d(x1, x2, W, cw)

    def lerp_idx(c, S):
        lo = jnp.clip(jnp.floor(c).astype(jnp.int32), 0, S - 1)
        hi = jnp.clip(lo + 1, 0, S - 1)
        f = c - jnp.floor(c)
        return lo, hi, f

    outs = []
    for b in range(boxes.shape[0]):
        img = image[box_ind[b]]
        z0, z1i, fz = lerp_idx(zc[b], D)
        y0, y1i, fy = lerp_idx(yc[b], H)
        x0, x1i, fx = lerp_idx(xc[b], W)

        def g(zi, yi, xi):
            return img[:, zi[:, None, None], yi[None, :, None], xi[None, None, :]]

        fz_ = fz[:, None, None]
        fy_ = fy[None, :, None]
        fx_ = fx[None, None, :]
        interp = (g(z0,  y0,  x0)  * (1 - fz_) * (1 - fy_) * (1 - fx_)
                  + g(z0,  y0,  x1i) * (1 - fz_) * (1 - fy_) * fx_
                  + g(z0,  y1i, x0)  * (1 - fz_) * fy_ * (1 - fx_)
                  + g(z0,  y1i, x1i) * (1 - fz_) * fy_ * fx_
                  + g(z1i, y0,  x0)  * fz_ * (1 - fy_) * (1 - fx_)
                  + g(z1i, y0,  x1i) * fz_ * (1 - fy_) * fx_
                  + g(z1i, y1i, x0)  * fz_ * fy_ * (1 - fx_)
                  + g(z1i, y1i, x1i) * fz_ * fy_ * fx_)
        valid = vz[b][:, None, None] & vy[b][None, :, None] & vx[b][None, None, :]
        outs.append(jnp.where(valid[None], interp, extrapolation_value))
    return jnp.stack(outs)


if __name__ == "__main__":
    key = jax.random.PRNGKey(0)
    B, C, D, H, W = 2, 4, 8, 16, 16
    crop_d, crop_h, crop_w = 4, 8, 8

    image = jax.random.normal(key, (B, C, D, H, W), dtype=jnp.float32)
    # boxes: (y1, x1, y2, x2, z1, z2), normalized; last box partly out of range.
    boxes = jnp.array([
        [0.10, 0.20, 0.80, 0.90, 0.00, 1.00],
        [0.00, 0.00, 1.00, 1.00, 0.25, 0.75],
        [-0.20, 0.30, 0.70, 1.30, 0.10, 0.60],
    ], dtype=jnp.float32)
    box_ind = jnp.array([0, 1, 0], dtype=jnp.int32)

    # 1) f32 path, nonzero extrapolation (exercises the extrapolation-add epilogue):
    #    tight parity with the 8-corner reference.
    crops_f32 = crop_and_resize_3d(image, boxes, box_ind, crop_h, crop_w, crop_d,
                                   extrapolation_value=0.5, use_bf16=False)
    crops_f32 = jax.block_until_ready(crops_f32)
    ref = crop_and_resize_3d_ref(image, boxes, box_ind, crop_h, crop_w, crop_d, 0.5)
    assert crops_f32.shape == (boxes.shape[0], C, crop_d, crop_h, crop_w)
    assert jnp.allclose(crops_f32, ref, atol=1e-3, rtol=1e-3), \
        float(jnp.max(jnp.abs(crops_f32 - ref)))

    # 2) default bf16 path, zero extrapolation (exercises the statically-skipped
    #    extrapolation input); compare against a reference fed the bf16-quantized
    #    image so only the bf16 weight rounding remains.
    crops_bf16 = crop_and_resize_3d(image, boxes, box_ind, crop_h, crop_w, crop_d,
                                    extrapolation_value=0.0)
    crops_bf16 = jax.block_until_ready(crops_bf16)
    image_q = image.astype(jnp.bfloat16).astype(jnp.float32)
    ref_q = crop_and_resize_3d_ref(image_q, boxes, box_ind, crop_h, crop_w, crop_d, 0.0)
    assert crops_bf16.shape == (boxes.shape[0], C, crop_d, crop_h, crop_w)
    assert jnp.allclose(crops_bf16, ref_q, atol=3e-2, rtol=3e-2), \
        float(jnp.max(jnp.abs(crops_bf16 - ref_q)))

    print("KERNEL_OK")
</pallas_src>

<mosaic_0001>
module attributes {stable_mosaic.version = 11 : i64} {
  func.func @kernel(%arg0: i32, %arg1: i32, %arg2: memref<3xi32, #tpu.memory_space<smem>>, %arg3: memref<1x32x256xf32, #tpu.memory_space<vmem>>, %arg4: memref<1x256x128xf32, #tpu.memory_space<vmem>>, %arg5: memref<1x4x8xf32, #tpu.memory_space<vmem>>, %arg6: memref<1x4x128xf32, #tpu.memory_space<vmem>>, %arg7: memref<1x4x4x128xf32, #tpu.memory_space<vmem>>) attributes {dimension_semantics = [#tpu.dimension_semantics<parallel>, #tpu.dimension_semantics<parallel>], iteration_bounds = array<i64: 1, 3>, scalar_prefetch = 1 : i64, scratch_operands = 0 : i64, tpu.core_type = #tpu.core_type<tc>, window_params = [{transform_indices = @transform_0, window_bounds = array<i64: 1, 32, 256>}, {transform_indices = @transform_1, window_bounds = array<i64: 1, 256, 128>}, {transform_indices = @transform_2, window_bounds = array<i64: 1, 4, 8>}, {transform_indices = @transform_3, window_bounds = array<i64: 1, 4, 128>}, {transform_indices = @transform_4, window_bounds = array<i64: 1, 4, 4, 128>}]} {
    %c0 = arith.constant 0 : index
    %c0_0 = arith.constant 0 : index
    %c0_1 = arith.constant 0 : index
    %0 = vector.load %arg3[%c0, %c0_0, %c0_1] : memref<1x32x256xf32, #tpu.memory_space<vmem>>, vector<1x32x256xf32>
    %1 = vector.shape_cast %0 : vector<1x32x256xf32> to vector<32x256xf32>
    %c0_2 = arith.constant 0 : index
    %c0_3 = arith.constant 0 : index
    %c0_4 = arith.constant 0 : index
    %2 = vector.load %arg4[%c0_2, %c0_3, %c0_4] : memref<1x256x128xf32, #tpu.memory_space<vmem>>, vector<1x256x128xf32>
    %3 = vector.shape_cast %2 : vector<1x256x128xf32> to vector<256x128xf32>
    %cst = arith.constant dense<0.000000e+00> : vector<32x128xf32>
    %4 = tpu.matmul %1, %3, %cst {dimension_numbers = #tpu.dot_dimension_numbers<[1], [0], [0], [1], [0, 0, 1, 1], [], []>} : vector<32x256xf32>, vector<256x128xf32>, vector<32x128xf32> -> vector<32x128xf32>
    %5 = vector.shape_cast %4 : vector<32x128xf32> to vector<4x8x128xf32>
    %c0_5 = arith.constant 0 : index
    %c0_6 = arith.constant 0 : index
    %c0_7 = arith.constant 0 : index
    %6 = vector.load %arg5[%c0_5, %c0_6, %c0_7] : memref<1x4x8xf32, #tpu.memory_space<vmem>>, vector<1x4x8xf32>
    %7 = vector.shape_cast %6 : vector<1x4x8xf32> to vector<4x8xf32>
    %cst_8 = arith.constant dense<0.000000e+00> : vector<4x4x128xf32>
    %8 = tpu.matmul %7, %5, %cst_8 {dimension_numbers = #tpu.dot_dimension_numbers<[1], [1], [0], [0, 2], [0, 0, 1, 0, 1, 2], [], []>} : vector<4x8xf32>, vector<4x8x128xf32>, vector<4x4x128xf32> -> vector<4x4x128xf32>
    %c0_9 = arith.constant 0 : index
    %c0_10 = arith.constant 0 : index
    %c0_11 = arith.constant 0 : index
    %9 = vector.load %arg6[%c0_9, %c0_10, %c0_11] : memref<1x4x128xf32, #tpu.memory_space<vmem>>, vector<1x4x128xf32>
    %10 = vector.shape_cast %9 : vector<1x4x128xf32> to vector<4x128xf32>
    %11 = vector.shape_cast %10 : vector<4x128xf32> to vector<4x1x128xf32>
    %12 = vector.broadcast %11 : vector<4x1x128xf32> to vector<4x4x128xf32>
    %13 = arith.addf %8, %12 : vector<4x4x128xf32>
    %c0_12 = arith.constant 0 : index
    %c0_13 = arith.constant 0 : index
    %c0_14 = arith.constant 0 : index
    %c0_15 = arith.constant 0 : index
    %14 = vector.load %arg7[%c0_12, %c0_13, %c0_14, %c0_15] : memref<1x4x4x128xf32, #tpu.memory_space<vmem>>, vector<1x4x4x128xf32>
    %15 = vector.shape_cast %14 : vector<1x4x4x128xf32> to vector<4x4x128xf32>
    %16 = vector.shape_cast %13 : vector<4x4x128xf32> to vector<1x4x4x128xf32>
    tpu.vector_store %arg7[%c0_12, %c0_13, %c0_14, %c0_15], %16 {strides = array<i32>} : memref<1x4x4x128xf32, #tpu.memory_space<vmem>>, vector<1x4x4x128xf32>,
    return
  }
  func.func @transform_0(%arg0: i32, %arg1: i32, %arg2: memref<3xi32, #tpu.memory_space<smem>>) -> (i32, i32, i32) {
    %0 = arith.index_cast %arg1 : i32 to index
    %1 = memref.load %arg2[%0] : memref<3xi32, #tpu.memory_space<smem>>
    %c0_i32 = arith.constant 0 : i32
    %c0_i32_0 = arith.constant 0 : i32
    return %1, %arg0, %c0_i32 : i32, i32, i32
  }
  func.func @transform_1(%arg0: i32, %arg1: i32, %arg2: memref<3xi32, #tpu.memory_space<smem>>) -> (i32, i32, i32) {
    %c0_i32 = arith.constant 0 : i32
    %c0_i32_0 = arith.constant 0 : i32
    %c0_i32_1 = arith.constant 0 : i32
    return %arg1, %c0_i32, %c0_i32_0 : i32, i32, i32
  }
  func.func @transform_2(%arg0: i32, %arg1: i32, %arg2: memref<3xi32, #tpu.memory_space<smem>>) -> (i32, i32, i32) {
    %c0_i32 = arith.constant 0 : i32
    %c0_i32_0 = arith.constant 0 : i32
    %c0_i32_1 = arith.constant 0 : i32
    return %arg1, %c0_i32, %c0_i32_0 : i32, i32, i32
  }
  func.func @transform_3(%arg0: i32, %arg1: i32, %arg2: memref<3xi32, #tpu.memory_space<smem>>) -> (i32, i32, i32) {
    %c0_i32 = arith.constant 0 : i32
    %c0_i32_0 = arith.constant 0 : i32
    %c0_i32_1 = arith.constant 0 : i32
    return %arg1, %c0_i32, %c0_i32_0 : i32, i32, i32
  }
  func.func @transform_4(%arg0: i32, %arg1: i32, %arg2: memref<3xi32, #tpu.memory_space<smem>>) -> (i32, i32, i32, i32) {
    %c0_i32 = arith.constant 0 : i32
    %c0_i32_0 = arith.constant 0 : i32
    %c0_i32_1 = arith.constant 0 : i32
    return %arg1, %c0_i32, %arg0, %c0_i32_0 : i32, i32, i32, i32
  }
}

module attributes {stable_mosaic.version = 11 : i64} {
  func.func @kernel(%arg0: i32, %arg1: i32, %arg2: memref<3xi32, #tpu.memory_space<smem>>, %arg3: memref<1x32x256xf32, #tpu.memory_space<vmem>>, %arg4: memref<1x256x128xf32, #tpu.memory_space<vmem>>, %arg5: memref<1x4x8xf32, #tpu.memory_space<vmem>>, %arg6: memref<1x4x128xf32, #tpu.memory_space<vmem>>, %arg7: memref<1x4x4x128xf32, #tpu.memory_space<vmem>>) attributes {dimension_semantics = [#tpu.dimension_semantics<parallel>, #tpu.dimension_semantics<parallel>], iteration_bounds = array<i64: 1, 3>, scalar_prefetch = 1 : i64, scratch_operands = 0 : i64, tpu.core_type = #tpu.core_type<tc>, window_params = [{transform_indices = @transform_0, window_bounds = array<i64: 1, 32, 256>}, {transform_indices = @transform_1, window_bounds = array<i64: 1, 256, 128>}, {transform_indices = @transform_2, window_bounds = array<i64: 1, 4, 8>}, {transform_indices = @transform_3, window_bounds = array<i64: 1, 4, 128>}, {transform_indices = @transform_4, window_bounds = array<i64: 1, 4, 4, 128>}]} {
    %c0 = arith.constant 0 : index
    %c0_0 = arith.constant 0 : index
    %c0_1 = arith.constant 0 : index
    %0 = vector.load %arg3[%c0, %c0_0, %c0_1] : memref<1x32x256xf32, #tpu.memory_space<vmem>>, vector<1x32x256xf32>
    %1 = vector.shape_cast %0 : vector<1x32x256xf32> to vector<32x256xf32>
    %c0_2 = arith.constant 0 : index
    %c0_3 = arith.constant 0 : index
    %c0_4 = arith.constant 0 : index
    %2 = vector.load %arg4[%c0_2, %c0_3, %c0_4] : memref<1x256x128xf32, #tpu.memory_space<vmem>>, vector<1x256x128xf32>
    %3 = vector.shape_cast %2 : vector<1x256x128xf32> to vector<256x128xf32>
    %cst = arith.constant dense<0.000000e+00> : vector<32x128xf32>
    %4 = tpu.matmul %1, %3, %cst {dimension_numbers = #tpu.dot_dimension_numbers<[1], [0], [0], [1], [0, 0, 1, 1], [], []>} : vector<32x256xf32>, vector<256x128xf32>, vector<32x128xf32> -> vector<32x128xf32>
    %5 = vector.shape_cast %4 : vector<32x128xf32> to vector<4x8x128xf32>
    %c0_5 = arith.constant 0 : index
    %c0_6 = arith.constant 0 : index
    %c0_7 = arith.constant 0 : index
    %6 = vector.load %arg5[%c0_5, %c0_6, %c0_7] : memref<1x4x8xf32, #tpu.memory_space<vmem>>, vector<1x4x8xf32>
    %7 = vector.shape_cast %6 : vector<1x4x8xf32> to vector<4x8xf32>
    %8 = vector.shape_cast %7 : vector<4x8xf32> to vector<1x4x8xf32>
    %9 = vector.shape_cast %8 : vector<1x4x8xf32> to vector<1x4x8xf32>
    %10 = vector.broadcast %9 : vector<1x4x8xf32> to vector<4x4x8xf32>
    %cst_8 = arith.constant dense<0.000000e+00> : vector<4x4x128xf32>
    %11 = tpu.matmul %10, %5, %cst_8 {dimension_numbers = #tpu.dot_dimension_numbers<[2], [1], [1], [2], [0, 0, 0, 1, 1, 2], [0], [0]>} : vector<4x4x8xf32>, vector<4x8x128xf32>, vector<4x4x128xf32> -> vector<4x4x128xf32>
    %c0_9 = arith.constant 0 : index
    %c0_10 = arith.constant 0 : index
    %c0_11 = arith.constant 0 : index
    %12 = vector.load %arg6[%c0_9, %c0_10, %c0_11] : memref<1x4x128xf32, #tpu.memory_space<vmem>>, vector<1x4x128xf32>
    %13 = vector.shape_cast %12 : vector<1x4x128xf32> to vector<4x128xf32>
    %14 = vector.shape_cast %13 : vector<4x128xf32> to vector<1x4x128xf32>
    %15 = vector.broadcast %14 : vector<1x4x128xf32> to vector<4x4x128xf32>
    %16 = arith.addf %11, %15 : vector<4x4x128xf32>
    %c0_12 = arith.constant 0 : index
    %c0_13 = arith.constant 0 : index
    %c0_14 = arith.constant 0 : index
    %c0_15 = arith.constant 0 : index
    %17 = vector.load %arg7[%c0_12, %c0_13, %c0_14, %c0_15] : memref<1x4x4x128xf32, #tpu.memory_space<vmem>>, vector<1x4x4x128xf32>
    %18 = vector.shape_cast %17 : vector<1x4x4x128xf32> to vector<4x4x128xf32>
    %19 = vector.shape_cast %16 : vector<4x4x128xf32> to vector<1x4x4x128xf32>
    tpu.vector_store %arg7[%c0_12, %c0_13, %c0_14, %c0_15], %19 {strides = array<i32>} : memref<1x4x4x128xf32, #tpu.memory_space<vmem>>, vector<1x4x4x128xf32>,
    return
  }
  func.func @transform_0(%arg0: i32, %arg1: i32, %arg2: memref<3xi32, #tpu.memory_space<smem>>) -> (i32, i32, i32) {
    %0 = arith.index_cast %arg1 : i32 to index
    %1 = memref.load %arg2[%0] : memref<3xi32, #tpu.memory_space<smem>>
    %c0_i32 = arith.constant 0 : i32
    %c0_i32_0 = arith.constant 0 : i32
    return %1, %arg0, %c0_i32 : i32, i32, i32
  }
  func.func @transform_1(%arg0: i32, %arg1: i32, %arg2: memref<3xi32, #tpu.memory_space<smem>>) -> (i32, i32, i32) {
    %c0_i32 = arith.constant 0 : i32
    %c0_i32_0 = arith.constant 0 : i32
    %c0_i32_1 = arith.constant 0 : i32
    return %arg1, %c0_i32, %c0_i32_0 : i32, i32, i32
  }
  func.func @transform_2(%arg0: i32, %arg1: i32, %arg2: memref<3xi32, #tpu.memory_space<smem>>) -> (i32, i32, i32) {
    %c0_i32 = arith.constant 0 : i32
    %c0_i32_0 = arith.constant 0 : i32
    %c0_i32_1 = arith.constant 0 : i32
    return %arg1, %c0_i32, %c0_i32_0 : i32, i32, i32
  }
  func.func @transform_3(%arg0: i32, %arg1: i32, %arg2: memref<3xi32, #tpu.memory_space<smem>>) -> (i32, i32, i32) {
    %c0_i32 = arith.constant 0 : i32
    %c0_i32_0 = arith.constant 0 : i32
    %c0_i32_1 = arith.constant 0 : i32
    return %arg1, %c0_i32, %c0_i32_0 : i32, i32, i32
  }
  func.func @transform_4(%arg0: i32, %arg1: i32, %arg2: memref<3xi32, #tpu.memory_space<smem>>) -> (i32, i32, i32, i32) {
    %c0_i32 = arith.constant 0 : i32
    %c0_i32_0 = arith.constant 0 : i32
    %c0_i32_1 = arith.constant 0 : i32
    return %arg1, %arg0, %c0_i32, %c0_i32_0 : i32, i32, i32, i32
  }
}

</mosaic_0001>

<bundles_post_ra>
// kernel: tpu_custom_call.1
= control target key start
LH: loop header
LB: loop body
LE: loop exit
PB: predicated region body
PF: predicated region fallthrough
CT: control target
= control target key end

     0   :  { %s1941_s0 = inlined_call_operand.hbm [shape: s32[3], index: 0, kind: input, shape index: {}]   ;;  %s1942_s1 = inlined_call_operand.hbm [shape: f32[2,32,256], index: 1, kind: input, shape index: {}]   ;;  %s1943_s2 = inlined_call_operand.hbm [shape: f32[3,256,128], index: 2, kind: input, shape index: {}]   ;;  %s1944_s3 = inlined_call_operand.hbm [shape: f32[3,4,8], index: 3, kind: input, shape index: {}]   ;;  %s1945_s4 = inlined_call_operand.vmem [shape: f32[3,4,128], index: 4, kind: input, shape index: {}]   ;;  %s1946_s5 = inlined_call_operand.hbm [shape: f32[3,4,4,128], index: 5, kind: output, shape index: {}]  }
   0x1   :  { %1962 = sst [smem:[#allocation23_spill]] %s1943_s2  ;;  %s1254_s20 = scalar_lea.hbm %s1941_s0, 16 }
   0x2   :  { %1963 = sst [smem:[#allocation24_spill]] %s1946_s5  ;;  %p1255_p0 = scmp.ne.s32.totalorder %s1941_s0, %s1254_s20 }
   0x3   :  { %p1258_p1 = scmp.lt.u32.totalorder %s1254_s20, %s1941_s0 }
   0x5   :  { %p1260_p2 = pnand %p1258_p1, %p1255_p0 }
   0x7   :  { %1263 = shalt.err (!%p1260_p2)  }
   0x8   :  { %s1468_s25 = smov [#allocation3]  }
   0x9   :  { %11 = dma.hbm_to_smem %s1941_s0, 16, %s1468_s25, [#allocation2] }
   0xa   :  { %1418 = dma.done.wait [#allocation2], 16 }
   0xb   :  { %1419 = vsyncadd [#allocation2], 4294967280 }
   0xc   :  { %13 = sfence }
   0xd   :  { %14 = vsyncpa [#allocation5], 0 }
   0xe   :  { %16 = vsyncpa [#allocation5 + $0x1], 0 }
   0xf   :  { %17 = vsyncpa [#allocation8], 0 }
  0x10   :  { %19 = vsyncpa [#allocation8 + $0x1], 0 }
  0x11   :  { %20 = vsyncpa [#allocation6], 0 }
  0x12   :  { %22 = vsyncpa [#allocation6 + $0x1], 0  ;;  %s1525_s28 = smov 0   ;;  %s1527_s29 = smov 0  }
  0x13   :  { %s1529_s30 = smov 0   ;;  %s1531_s6 = smov 0  }
  0x14   :  { %s1533_s7 = smov 0   ;;  %s1535_s0 = smov 0  }
  0x15   :  { %s1537_s8 = smov 0   ;;  %s1539_s9 = smov 0  }
  0x16   :  { %s1541_s10 = smov 0  }
  0x17 LB: > { %1964 = sst [smem:[#allocation17_spill]] %s1434_s28  ;;  %s1571_s11 = sadd.s32 4294967295, %s1466_s10   ;;  %s1466_s10 = sphi %s1541_s10, %s28_s10   ;;  %s1462_s9 = sphi %s1539_s9, %s2006_s9   ;;  %s1458_s8 = sphi %s1537_s8, %s2005_s8   ;;  %s1454_s0 = sphi %s1535_s0, %s2004_s0   ;;  %s1450_s7 = sphi %s1533_s7, %s2003_s7   ;;  %s1446_s6 = sphi %s1531_s6, %s2002_s6   ;;  %s1442_s30 = sphi %s1529_s30, %s2001_s30   ;;  %s1438_s29 = sphi %s1527_s29, %s2000_s29   ;;  %s1434_s28 = sphi %s1525_s28, %s1999_s28  }
  0x18   : > { %1965 = sst [smem:[#allocation18_spill]] %s1466_s10  ;;  %s1019_s12 = sadd.s32 4294967294, %s1466_s10  }
  0x19   : > { %s37_s13 = sadd.s32 1, %s1462_s9  ;;  %s1576_s14 = sld [smem:[#allocation3 + %s1462_s9]] }
  0x1a   : > { %p38_p3 = scmp.ge.s32.totalorder %s37_s13, 3  ;;  %p1951_p4 = scmp.eq.s32.totalorder %s1466_s10, 0 }
  0x1b   : > { %p1950_p5 = scmp.eq.s32.totalorder %s1571_s11, 0  ;;  %s77_s15 = sadd.s32 1, %s1442_s30 }
  0x1c   : > { %s2008_s13 = smov (%p38_p3, %s37_s13), 0  ;;  %p84_p6 = scmp.ne.s32.totalorder %s1442_s30, %s1438_s29 }
  0x1d   : > { %1966 = sst [smem:[#allocation19_spill]] %s2008_s13  ;;  %p90_p7 = scmp.ne.s32.totalorder %s1438_s29, %s1434_s28 }
  0x1e   : > { %s1588_s16 = sld [smem:[#allocation3 + %s2008_s13]]  ;;  %s74_s17 = ssub.s32 %s1462_s9, %s2008_s13 }
  0x1f   : > { %p75_p8 = scmp.eq.s32.totalorder %s74_s17, 0  ;;  %p1594_p9 = por %p84_p6, %p1951_p4 }
  0x20   : > { %p1600_p10 = por %p90_p7, %p1950_p5  ;;  %p168_p11 = scmp.eq.s32.totalorder %s1571_s11, 2 }
  0x21   : > { %s1606_s20 = scalar_select %p75_p8, %s1442_s30, %s77_s15  }
  0x22   : > { %s1968_s19 = scalar_select %p1600_p10, 1, 0 }
  0x23   : > { %1969 = sst [smem:[#allocation20_spill]] %s1606_s20  ;;  %p1608_p12 = por %p168_p11, %p84_p6 }
  0x24   : > { %p174_p13 = scmp.eq.s32.totalorder %s1019_s12, 2  ;;  %p1949_p0 = scmp.lt.s32.totalorder %s1466_s10, 3 }
  0x25   : > { %s1970_s21 = scalar_select %p1608_p12, 1, 0 }
  0x26   : > { %p1613_p1 = por %p174_p13, %p90_p7  ;;  %s219_s23 = sand.u32 1, %s1466_s10  }
  0x27   : > { %s1948_s24 = sand.u32 1, %s1442_s30   ;;  %s1049_s26 = sshll.u32 %s1462_s9, 12 }
  0x28   : > { %s1971_s22 = scalar_select %p1613_p1, 1, 0 }
  0x29   : > { %s1025_s25 = sshll.u32 %s1948_s24, 8  ;;  %s1973_s2 = sld [smem:[#allocation23_spill]] }
  0x2a   : > { %1972 = sst [smem:[#allocation21_spill]] %s1971_s22  ;;  %s223_s12 = scalar_lea.vmem [#allocation7], %s1025_s25 }
  0x2b   : > { %s230_s13 = sshll.u32 %s223_s12, 4  ;;  %p1631_p2 = pnand %p1949_p0, %p1594_p9  ;;  %s1635_s13 = int_to_ptr.vmem [resolvable:$true] %s230_s13 }
  0x2c   : > { %s1637_s24 = scalar_lea.sflag [#allocation8], %s219_s23 }
  0x2d   : > { %p1266_p6 = pneg %p1631_p2 }
  0x2f   : > { %s1625_s15 = scalar_lea.hbm %s1973_s2, %s1049_s26  ;;  %s1269_s27 = scalar_lea.hbm %s1973_s2, 12288 }
  0x30   : > { %s1264_s26 = scalar_lea.hbm %s1625_s15, 4096  ;;  %p1270_p9 = scmp.lt.u32.totalorder %s1625_s15, %s1973_s2 }
  0x31   : > { %p1265_p3 = scmp.ne.s32.totalorder %s1625_s15, %s1264_s26  ;;  %p1271_p11 = scmp.lt.u32.totalorder %s1269_s27, %s1264_s26 }
  0x32   : > { %p1273_p0 = scmp.lt.u32.totalorder %s1264_s26, %s1625_s15 }
  0x33   : > { %p1267_p7 = pnand %p1266_p6, %p1265_p3  ;;  %p1272_p13 = por %p1271_p11, %p1270_p9 }
  0x35   : > { %p1268_p8 = pneg %p1267_p7  ;;  %p1274_p5 = por %p1273_p0, %p1272_p13 }
  0x37   : > { %p1275_p4 = pnand %p1274_p5, %p1268_p8 }
  0x39   : > { %1278 = shalt.err (!%p1275_p4)
}
  0x3a   : > { %s1279_s23 = scalar_lea.vmem %s1635_s13, 4096  ;;  %s1469_s18 = smov [#allocation7]  }
  0x3b   : > { %p1280_p3 = scmp.ne.s32.totalorder %s1635_s13, %s1279_s23  ;;  %s1284_s25 = sshll.u32 %s1469_s18, 4  ;;  %s1285_s25 = int_to_ptr.vmem [resolvable:$false] %s1284_s25 }
  0x3c   : > { %s1286_s17 = scalar_lea.vmem %s1285_s25, 8192  ;;  %p1287_p12 = scmp.lt.s32.totalorder %s1635_s13, %s1285_s25 }
  0x3d   : > { %p1282_p7 = pnand %p1280_p3, %p1266_p6  ;;  %p1288_p9 = scmp.lt.s32.totalorder %s1286_s17, %s1279_s23 }
  0x3f   : > { %p1283_p1 = pneg %p1282_p7  ;;  %p1289_p11 = por %p1288_p9, %p1287_p12 }
  0x41   : > { %p1290_p0 = pnand %p1289_p11, %p1283_p1 }
  0x43   : > { %1293 = shalt.err (!%p1290_p0)
}
  0x44   : > { %s1470_s26 = smov 128   ;;  %s1471_s27 = smov 8  }
  0x45   : > { %1161 = dma.hbm_to_vmem [thread:$0]  (!%p1631_p2), %s1625_s15, 4096, %s1635_s13, %s1637_s24, %s1470_s26, %s1470_s26, %s1471_s27  }
  0x46   : > { %p1030_p4 = scmp.ge.s32.totalorder %s1466_s10, 1  ;;  %p263_p5 = scmp.lt.s32.totalorder %s1466_s10, 4 }
  0x47   : > { %s46_s23 = ssub.s32 %s1576_s14, %s1588_s16  ;;  %s51_s18 = sadd.s32 1, %s1454_s0 }
  0x48   : > { %p1667_p12 = pnand %p1030_p4, %p263_p5  ;;  %p49_p1 = scmp.eq.s32.totalorder %s46_s23, 0 }
  0x49   : > { %p58_p8 = scmp.ne.s32.totalorder %s1454_s0, %s1450_s7  ;;  %p64_p13 = scmp.ne.s32.totalorder %s1450_s7, %s1446_s6 }
  0x4a   : > { %s1975_s12 = scalar_select %p1667_p12, 1, 0 }
  0x4b   : > { %s1679_s25 = scalar_select %p49_p1, %s1454_s0, %s51_s18  }
  0x4c   : > { %p1977_p3 = scmp.eq.s32.totalorder %s1466_s10, 0  ;;  %p1978_p9 = scmp.eq.s32.totalorder %s1571_s11, 0 }
  0x4d   : > { %1976 = sst [smem:[#allocation22_spill]] %s1679_s25  ;;  %s1953_s15 = sand.u32 1, %s1454_s0  }
  0x4e   : > { %p60_p7 = por %p1977_p3, %p58_p8  ;;  %p1685_p11 = por %p1978_p9, %p64_p13 }
  0x4f   : > { %s1022_s17 = sshll.u32 %s1953_s15, 6  ;;  %p1980_p0 = scmp.lt.s32.totalorder %s1466_s10, 3 }
  0x50   : > { %s1979_s13 = scalar_select %p1685_p11, 1, 0 }
  0x51   : > { %p1694_p4 = pnand %p1980_p0, %p60_p7  ;;  %p1982_p5 = pmov %p1980_p0 }
  0x52   : > { %s1143_s16 = scalar_select %p60_p7, [#allocation3], [#allocation11] }
  0x53   : > { %s1981_s14 = scalar_select %p1694_p4, 1, 0 }
  0x54   : > { %s1144_s6 = scalar_select %p60_p7, %s1462_s9, 0 }
  0x55   : > { %s2010_s16 = smov (!%p1982_p5, %s1143_s16), [#allocation12]  ;;  %p1983_p1 = pmov %p1980_p0 }
  0x56   : > { %s198_s26 = scalar_lea.vmem [#allocation4], %s1022_s17  ;;  %s1984_s18 = sand.u32 1, %s1442_s30  }
  0x57   : > { %s2012_s6 = smov (!%p1983_p1, %s1144_s6), 0  ;;  %s209_s27 = sshll.u32 %s198_s26, 4  ;;  %s1705_s27 = int_to_ptr.vmem [resolvable:$true] %s209_s27 }
  0x58   : > { %s1703_s23 = sld [smem:[%s2010_s16 + %s2012_s6]]  ;;  %s1028_s15 = sshll.u32 %s1984_s18, 2 }
  0x59   : > { %s1029_s2 = sshll.u32 %s1462_s9, 6  ;;  %s244_s10 = scalar_lea.vmem [#allocation9], %s1028_s15 }
  0x5a   : > { %s1713_s28 = scalar_lea.hbm %s1944_s3, %s1029_s2  ;;  %s251_s5 = sshll.u32 %s244_s10, 4  ;;  %s252_s5 = int_to_ptr.vmem [resolvable:$true] %s251_s5 }
  0x5b   : > { %s1294_s17 = scalar_lea.hbm %s1713_s28, 64  ;;  %s1299_s26 = scalar_lea.hbm %s1944_s3, 192 }
  0x5c   : > { %p1295_p8 = scmp.ne.s32.totalorder %s1713_s28, %s1294_s17  ;;  %p1300_p7 = scmp.lt.u32.totalorder %s1713_s28, %s1944_s3 }
  0x5d   : > { %p1301_p9 = scmp.lt.u32.totalorder %s1299_s26, %s1294_s17  ;;  %p1303_p5 = scmp.lt.u32.totalorder %s1294_s17, %s1713_s28 }
  0x5e   : > { %p1297_p13 = pnand %p1295_p8, %p1266_p6 }
  0x5f   : > { %p1302_p0 = por %p1301_p9, %p1300_p7 }
  0x60   : > { %p1298_p3 = pneg %p1297_p13 }
  0x61   : > { %p1304_p1 = por %p1303_p5, %p1302_p0 }
  0x63   : > { %p1305_p10 = pnand %p1304_p1, %p1298_p3 }
  0x65   : > { %1308 = shalt.err (!%p1305_p10)
}
  0x66   : > { %s1309_s10 = scalar_lea.vmem %s252_s5, 64  ;;  %s1472_s25 = smov [#allocation9]  }
  0x67   : > { %p1310_p11 = scmp.ne.s32.totalorder %s252_s5, %s1309_s10  ;;  %s1314_s15 = sshll.u32 %s1472_s25, 4  ;;  %s1315_s15 = int_to_ptr.vmem [resolvable:$false] %s1314_s15 }
  0x68   : > { %s1316_s18 = scalar_lea.vmem %s1315_s15, 128  ;;  %p1317_p12 = scmp.lt.s32.totalorder %s252_s5, %s1315_s15 }
  0x69   : > { %p1312_p8 = pnand %p1310_p11, %p1266_p6  ;;  %p1318_p4 = scmp.lt.s32.totalorder %s1316_s18, %s1309_s10 }
  0x6b   : > { %p1313_p13 = pneg %p1312_p8  ;;  %p1319_p7 = por %p1318_p4, %p1317_p12 }
  0x6d   : > { %p1320_p9 = pnand %p1319_p7, %p1313_p13 }
  0x6f   : > { %1323 = shalt.err (!%p1320_p9)
}
  0x70   : > { %1164 = dma.hbm_to_vmem [thread:$0]  (!%p1631_p2), %s1713_s28, 64, %s252_s5, %s1637_s24  }
  0x71   : > { %s1048_s17 = sshll.u32 %s1703_s23, 10  ;;  %s1985_s22 = sand.u32 1, %s1454_s0  }
  0x72   : > { %s1739_s26 = scalar_lea.hbm %s1942_s1, %s1048_s17  ;;  %s1743_s2 = scalar_lea.sflag [#allocation5], %s1985_s22 }
  0x73   : > { %s1324_s20 = scalar_lea.hbm %s1739_s26, 1024  ;;  %p1986_p6 = scmp.ne.s32.totalorder %s1981_s14, 0 }
  0x74   : > { %p1325_p10 = scmp.ne.s32.totalorder %s1739_s26, %s1324_s20  ;;  %s1329_s24 = scalar_lea.hbm %s1942_s1, 2048 }
  0x75   : > { %p1326_p12 = pneg %p1986_p6  ;;  %p1330_p4 = scmp.lt.u32.totalorder %s1739_s26, %s1942_s1 }
  0x76   : > { %p1331_p3 = scmp.lt.u32.totalorder %s1329_s24, %s1324_s20  ;;  %p1333_p5 = scmp.lt.u32.totalorder %s1324_s20, %s1739_s26 }
  0x77   : > { %p1327_p2 = pnand %p1326_p12, %p1325_p10 }
  0x78   : > { %p1332_p0 = por %p1331_p3, %p1330_p4 }
  0x79   : > { %p1328_p11 = pneg %p1327_p2 }
  0x7a   : > { %p1334_p1 = por %p1333_p5, %p1332_p0 }
  0x7c   : > { %p1335_p8 = pnand %p1334_p1, %p1328_p11 }
  0x7e   : > { %1338 = shalt.err (!%p1335_p8)
}
  0x7f   : > { %s1339_s25 = scalar_lea.vmem %s1705_s27, 1024  ;;  %s1473_s15 = smov [#allocation4]  }
  0x80   : > { %p1340_p13 = scmp.ne.s32.totalorder %s1705_s27, %s1339_s25  ;;  %s1344_s18 = sshll.u32 %s1473_s15, 4  ;;  %s1345_s18 = int_to_ptr.vmem [resolvable:$false] %s1344_s18 }
  0x81   : > { %s1346_s17 = scalar_lea.vmem %s1345_s18, 2048  ;;  %p1347_p10 = scmp.lt.s32.totalorder %s1705_s27, %s1345_s18 }
  0x82   : > { %p1342_p7 = pnand %p1340_p13, %p1326_p12  ;;  %p1348_p2 = scmp.lt.s32.totalorder %s1346_s17, %s1339_s25 }
  0x84   : > { %p1343_p9 = pneg %p1342_p7  ;;  %p1349_p4 = por %p1348_p2, %p1347_p10 }
  0x86   : > { %p1350_p3 = pnand %p1349_p4, %p1343_p9 }
  0x88   : > { %1353 = shalt.err (!%p1350_p3)
}
  0x89   : > { %s1474_s16 = smov 256   ;;  %s1475_s6 = smov 16  }
  0x8a   : > { %1158 = dma.hbm_to_vmem [thread:$0]  (!%p1986_p6), %s1739_s26, 1024, %s1705_s27, %s1743_s2, %s1474_s16, %s1474_s16, %s1475_s6  }
  0x8b   : > { %p1987_p12 = scmp.ne.s32.totalorder %s1975_s12, 0 }
  0x8c   : > { %s269_s22 = sand.u32 (!%p1987_p12), 1, %s1450_s7   ;;  %p1988_p11 = scmp.ne.s32.totalorder (!%p1987_p12), %s1979_s13, 0 }
  0x8d   : > { %267 = sbr.rel (%p1987_p12) target bundleno = 676 (0x2a4), region = 36  ;;  %s1031_s20 = sshll.u32 (!%p1987_p12), %s269_s22, 6 }
  0x8e   : > { %s270_s5 = scalar_lea.sflag (!%p1987_p12), [#allocation5], %s269_s22  ;;  %s1774_s28 = scalar_lea.vmem (!%p1987_p12), [#allocation4], %s1031_s20 }
  0x94   : > { %1421 = dma.done.wait (%p1988_p11), %s270_s5, 1024  }
  0x95   : > { %1423 = vsyncadd (%p1988_p11), %s270_s5, 4294966272  ;;  %s278_s14 = sand.u32 1, %s1571_s11   ;;  %s1782_s27 = sand.u32 1, %s1438_s29  }
  0x96   : > { %s1032_s12 = sshll.u32 %s1782_s27, 8  ;;  %s279_s26 = scalar_lea.sflag [#allocation8], %s278_s14 }
  0x97   : > { %s1785_s2 = scalar_lea.vmem [#allocation7], %s1032_s12  ;;  %p1989_p6 = scmp.ne.s32.totalorder %s1968_s19, 0 }
  0x99   : > { %1425 = dma.done.wait (%p1989_p6), %s279_s26, 4160  }
  0x9a   : > { %1427 = vsyncadd (%p1989_p6), %s279_s26, 4294963136  ;;  %v360_v0 = vld [vmem:[%s1785_s2 + $0x80] sm:$0xff]  ;;  %v361_v1 = vld [vmem:[%s1785_s2 + $0x88] sm:$0xff]  ;;  %v1476_v56 = vmov 0.0   ;;  %v475_v61 = vlaneseq  ;;  %s1033_s11 = sshll.u32 %s1782_s27, 2  ;;  %vm678_vm0 = vcmask 64512  }
  0x9b   : > { %v344_v2 = vld [vmem:[%s1785_s2] sm:$0xff]  ;;  %v1095_v3 = vpack.c.bf16 %v361_v1, %v360_v0  ;;  %v345_v4 = vld [vmem:[%s1785_s2 + $0x8] sm:$0xff]  ;;  %v362_v5 = vld [vmem:[%s1785_s2 + $0x90] sm:$0xff]  ;;  %v1477_v0 = vmov 1983009808   ;;  %s291_s19 = scalar_lea.vmem [#allocation9], %s1033_s11 }
  0x9c   : > { %v363_v6 = vld [vmem:[%s1785_s2 + $0x98] sm:$0xff]  ;;  %v1097_v7 = vpack.c.bf16 %v345_v4, %v344_v2  ;;  %v346_v9 = vld [vmem:[%s1785_s2 + $0x10] sm:$0xff]  ;;  %v364_v11 = vld [vmem:[%s1785_s2 + $0xa0] sm:$0xff]  ;;  %v511_v1 = vunpack.c.l.s4 %v1477_v0  ;;  %v1478_v4 = vmov 1934713408   ;;  %p332_p0 = scmp.lt.s32.totalorder %s1458_s8, 2 }
  0x9d   : > { %v1099_v8 = vpack.c.bf16 %v363_v6, %v362_v5  ;;  %v347_v10 = vld [vmem:[%s1785_s2 + $0x18] sm:$0xff]  ;;  %1096 = vmatprep.subr.bf16.mxu0 %v1095_v3  ;;  %1127 = vmatprep.subr.bf16.mxu1 %v1095_v3  ;;  %v365_v12 = vld [vmem:[%s1785_s2 + $0xa8] sm:$0xff]  ;;  %v348_v15 = vld [vmem:[%s1785_s2 + $0x20] sm:$0xff]  ;;  %v543_v5 = vunpack.c.l.s4 %v1478_v4  ;;  %s1034_s15 = sshll.u32 %s1782_s27, 4  ;;  %s1050_s16 = sshll.u32 %s1458_s8, 8 }
  0x9e   : > { %1098 = vmatpush3.bf16.msra.mxu0 %v1097_v7  ;;  %1135 = vmatpush3.bf16.msra.mxu1 %v1097_v7  ;;  %v1101_v13 = vpack.c.bf16 %v347_v10, %v346_v9  ;;  %v1103_v14 = vpack.c.bf16 %v365_v12, %v364_v11  ;;  %v349_v16 = vld [vmem:[%s1785_s2 + $0x28] sm:$0xff]  ;;  %v366_v17 = vld [vmem:[%s1785_s2 + $0xb0] sm:$0xff]  ;;  %v367_v18 = vld [vmem:[%s1785_s2 + $0xb8] sm:$0xff]  ;;  %v1832_v7 = vshrl.u32 %v475_v61, 7  ;;  %s333_s13 = scalar_select %p332_p0, %s1458_s8, 2 }
  0x9f   : > { %1100 = vmatprep.subr.bf16.mxu0 %v1099_v8  ;;  %1128 = vmatprep.subr.bf16.mxu1 %v1099_v8  ;;  %v1105_v19 = vpack.c.bf16 %v349_v16, %v348_v15  ;;  %v1107_v20 = vpack.c.bf16 %v367_v18, %v366_v17  ;;  %v350_v21 = vld [vmem:[%s1785_s2 + $0x30] sm:$0xff]  ;;  %v351_v22 = vld [vmem:[%s1785_s2 + $0x38] sm:$0xff]  ;;  %v368_v23 = vld [vmem:[%s1785_s2 + $0xc0] sm:$0xff]  ;;  %v512_v8 = vunpack.c.0.s8 %v511_v1  ;;  %s329_s18 = scalar_lea.vmem [#allocation10], %s1034_s15  ;;  %s1990_s20 = sld [smem:[#allocation24_spill]] }
  0xa0   : > { %v369_v24 = vld [vmem:[%s1785_s2 + $0xc8] sm:$0xff]  ;;  %v343_v26 = vld [vmem:[%s1774_s28 + $0x38] sm:$0xff]  ;;  %v1109_v27 = vpack.c.bf16 %v351_v22, %v350_v21  ;;  %v352_v29 = vld [vmem:[%s1785_s2 + $0x40] sm:$0xff]  ;;  %s1035_s24 = sshll.u32 %s333_s13, 2  ;;  %s877_s17 = sshll.u32 %s329_s18, 4  ;;  %s1877_s17 = int_to_ptr.vmem [resolvable:$true] %s877_s17 }
  0xa1   : > { %v337_v25 = vld [vmem:[%s1774_s28 + $0x8] sm:$0xff]  ;;  %v1111_v28 = vpack.c.bf16 %v369_v24, %v368_v23  ;;  %v370_v31 = vld [vmem:[%s1785_s2 + $0xd0] sm:$0xff]  ;;  %v371_v32 = vld [vmem:[%s1785_s2 + $0xd8] sm:$0xff]  ;;  %455 = vmatprep.mubr.f32.mxu1 %v343_v26  ;;  %s335_s25 = scalar_lea.vmem %s1945_s4, %s1035_s24  ;;  %s863_s8 = scalar_lea.sflag [#allocation6], %s1782_s27 }
  0xa2   : > { %1102 = vmatpush3.bf16.msra.mxu0 %v1101_v13  ;;  %1136 = vmatpush3.bf16.msra.mxu1 %v1101_v13  ;;  %v353_v30 = vld [vmem:[%s1785_s2 + $0x48] sm:$0xff]  ;;  %v1115_v34 = vpack.c.bf16 %v371_v32, %v370_v31  ;;  %v354_v35 = vld [vmem:[%s1785_s2 + $0x50] sm:$0xff]  ;;  %v355_v36 = vld [vmem:[%s1785_s2 + $0x58] sm:$0xff]  ;;  %v544_v13 = vunpack.c.0.s8 %v543_v5  ;;  %p1991_p1 = scmp.ne.s32.totalorder %s1970_s21, 0  ;;  %s1480_s14 = smov [#allocation10]  }
  0xa3   : > { %1104 = vmatprep.subr.bf16.mxu0 %v1103_v14  ;;  %1129 = vmatprep.subr.bf16.mxu1 %v1103_v14  ;;  %v1113_v33 = vpack.c.bf16 %v353_v30, %v352_v29  ;;  %v372_v37 = vld [vmem:[%s1785_s2 + $0xe0] sm:$0xff]  ;;  %v373_v38 = vld [vmem:[%s1785_s2 + $0xe8] sm:$0xff]  ;;  %v1117_v39 = vpack.c.bf16 %v355_v36, %v354_v35  ;;  %v374_v43 = vld [vmem:[%s1785_s2 + $0xf0] sm:$0xff]  ;;  %v1835_v14 = vsub.s32 %v512_v8, %v1832_v7  ;;  %s1358_s12 = sshll.u32 %s1480_s14, 4  ;;  %s1359_s12 = int_to_ptr.vmem [resolvable:$false] %s1358_s12 }
  0xa4   : > { %440 = vmatprep.mubr.f32.mxu0 %v337_v25  ;;  %v1119_v40 = vpack.c.bf16 %v373_v38, %v372_v37  ;;  %v356_v41 = vld [vmem:[%s1785_s2 + $0x60] sm:$0xff]  ;;  %v357_v42 = vld [vmem:[%s1785_s2 + $0x68] sm:$0xff]  ;;  %v375_v44 = vld [vmem:[%s1785_s2 + $0xf8] sm:$0xff]  ;;  %v1838_v18 = vsub.s32 %v544_v13, %v1832_v7  ;;  %s1360_s26 = scalar_lea.vmem %s1359_s12, 512  ;;  %p1361_p7 = scmp.lt.s32.totalorder %s1877_s17, %s1359_s12 }
  0xa5   : > { %v1121_v45 = vpack.c.bf16 %v357_v42, %v356_v41  ;;  %v1123_v46 = vpack.c.bf16 %v375_v44, %v374_v43  ;;  %v358_v47 = vld [vmem:[%s1785_s2 + $0x70] sm:$0xff]  ;;  %v359_v48 = vld [vmem:[%s1785_s2 + $0x78] sm:$0xff]  ;;  %v336_v50 = vld [vmem:[%s1774_s28] sm:$0xff]  ;;  %s1882_s5 = scalar_lea.hbm %s1990_s20, %s1050_s16 }
  0xa6   : > { %1106 = vmatpush3.bf16.msra.mxu0 %v1105_v19  ;;  %1137 = vmatpush3.bf16.msra.mxu1 %v1105_v19  ;;  %v1125_v49 = vpack.c.bf16 %v359_v48, %v358_v47  ;;  %v342_v51 = vld [vmem:[%s1774_s28 + $0x30] sm:$0xff]  ;;  %v339_v52 = vld [vmem:[%s1774_s28 + $0x18] sm:$0xff]  ;;  %v341_v54 = vld [vmem:[%s1774_s28 + $0x28] sm:$0xff] }
  0xa7   : > { %1108 = vmatprep.subr.bf16.mxu0 %v1107_v20  ;;  %1130 = vmatprep.subr.bf16.mxu1 %v1107_v20  ;;  %v338_v53 = vld [vmem:[%s1774_s28 + $0x10] sm:$0xff]  ;;  %v340_v55 = vld [vmem:[%s1774_s28 + $0x20] sm:$0xff]  ;;  %s1354_s28 = scalar_lea.vmem %s1877_s17, 256 }
  0xa8   : > { %p1355_p5 = scmp.ne.s32.totalorder %s1877_s17, %s1354_s28  ;;  %p1362_p9 = scmp.lt.s32.totalorder %s1360_s26, %s1354_s28 }
  0xaa   : > { %1110 = vmatpush3.bf16.msra.mxu0 %v1109_v27  ;;  %1138 = vmatpush3.bf16.msra.mxu1 %v1109_v27  ;;  %p1356_p8 = pnand %p1355_p5, %p1991_p1  ;;  %p1363_p10 = por %p1362_p9, %p1361_p7 }
  0xab   : > { %1112 = vmatprep.subr.bf16.mxu0 %v1111_v28  ;;  %1131 = vmatprep.subr.bf16.mxu1 %v1111_v28 }
  0xac   : > { %p1357_p13 = pneg %p1356_p8 }
  0xae   : > { %1114 = vmatpush3.bf16.msra.mxu0 %v1113_v33  ;;  %1139 = vmatpush3.bf16.msra.mxu1 %v1113_v33  ;;  %p1364_p2 = pnand %p1363_p10, %p1357_p13 }
  0xaf   : > { %1116 = vmatprep.subr.bf16.mxu0 %v1115_v34  ;;  %1132 = vmatprep.subr.bf16.mxu1 %v1115_v34 }
  0xb2   : > { %1118 = vmatpush3.bf16.msra.mxu0 %v1117_v39  ;;  %1140 = vmatpush3.bf16.msra.mxu1 %v1117_v39 }
  0xb3   : > { %1120 = vmatprep.subr.bf16.mxu0 %v1119_v40  ;;  %1133 = vmatprep.subr.bf16.mxu1 %v1119_v40 }
  0xb6   : > { %1122 = vmatpush3.bf16.msra.mxu0 %v1121_v45  ;;  %1141 = vmatpush3.bf16.msra.mxu1 %v1121_v45 }
  0xb7   : > { %1124 = vmatprep.subr.bf16.mxu0 %v1123_v46  ;;  %1134 = vmatprep.subr.bf16.mxu1 %v1123_v46 }
  0xba   : > { %1126 = vmatpush3.bf16.msra.mxu0 %v1125_v49  ;;  %1142 = vmatpush3.bf16.msra.mxu1 %v1125_v49 }
  0xbd   : > { %441 = vmatmul.mubr.f32.vlgmr.msra.gmra.mrb[0].mxu0 %v336_v50  ;;  %456 = vmatmul.mubr.f32.vlgmr.msra.gmra.mrb[0].mxu1 %v342_v51  ;;  %v461_v51 = vld [vmem:[%s291_s19] sm:$0xf] }
  0xbe   : > { %445 = vmatprep.mubr.f32.mxu0 %v339_v52  ;;  %746 = vmatprep.mubr.f32.mxu1 %v1476_v56  ;;  %v1479_v52 = vmov 1966171168  }
  0xc1   : > { %446 = vmatmul.mubr.f32.gmra.mrb[2].mxu0 %v338_v53  ;;  %v473_v53 = vunpack.c.l.s4 %v1479_v52 }
  0xc2   : > { %450 = vmatprep.mubr.f32.mxu0 %v341_v54 }
  0xc3   : > { %v474_v54 = vunpack.c.0.s8 %v473_v53 }
  0xc5   : > { %451 = vmatmul.mubr.f32.gmra.mrb[4].mxu0 %v340_v55  ;;  %v1036_v55 = vld.sshfl [vmem:[%s335_s25] sm:$0x33 pattern:$0x75316420] }
 0x190   : > { %v1083_v57 = vpop.f32.mrb[0].mxu0  ;;  %v1092_v58 = vpop.f32.mrb[0].mxu1 }
 0x191   : > { %v1084_v59 = vpop.f32.mrb[1].mxu0  ;;  %v1093_v60 = vpop.f32.mrb[1].mxu1 }
 0x192   : > { %v1085_v62 = vadd.f32 %v1084_v59, %v1083_v57  ;;  %v1094_v63 = vadd.f32 %v1093_v60, %v1092_v58  ;;  %v471_v57 = vcombine.high %v1036_v55, %v1036_v55  ;;  %v477_v58 = vsub.s32 %v474_v54, %v1832_v7 }
 0x194   : > { %v1086_v2 = vpop.f32.mrb[2].mxu0  ;;  %v478_v59 = vrot.slane %v1036_v55, %v477_v58  ;;  %v485_v60 = vrot.slane %v471_v57, %v477_v58 }
 0x195   : > { %v1087_v3 = vpop.f32.mrb[3].mxu0 }
 0x196   : > { %v1088_v6 = vadd.f32 %v1087_v3, %v1086_v2  ;;  %v486_v61 = vcombine.high %v478_v59, %v478_v59 }
 0x198   : > { %v524_v9 = vcombine.low %v1088_v6, %v1094_v63  ;;  %v525_v10 = vcombine.high %v1088_v6, %v1094_v63  ;;  %v1089_v11 = vpop.f32.mrb[4].mxu0  ;;  %v490_v63 = vsub.s32 0, %v1832_v7 }
 0x199   : > { %v1090_v12 = vpop.f32.mrb[5].mxu0 }
 0x19a   : > { %v1091_v15 = vadd.f32 %v1090_v12, %v1089_v11  ;;  %v532_v19 = vrot.slane %v524_v9, %v1835_v14  ;;  %v539_v20 = vrot.slane %v525_v10, %v1835_v14  ;;  %v491_v0 = vrot.slane %v478_v59, %v490_v63 }
 0x19b   : > { %v495_v1 = vrot.slane %v485_v60, %v490_v63  ;;  %v499_v2 = vrot.slane %v486_v61, %v490_v63 }
 0x19c   : > { %v508_v16 = vcombine.low %v1085_v62, %v1091_v15  ;;  %v509_v17 = vcombine.high %v1085_v62, %v1091_v15  ;;  %v487_v62 = vcombine.high %v485_v60, %v485_v60 }
 0x19d   : > { %v644_v4 = vcombine.low %v491_v0, %v499_v2 }
 0x19e   : > { %v516_v21 = vrot.slane %v508_v16, %v1835_v14  ;;  %v523_v22 = vrot.slane %v509_v17, %v1835_v14  ;;  %v503_v3 = vrot.slane %v487_v62, %v490_v63 }
 0x19f   : > { %v651_v6 = vrot.slane %v644_v4, %v1835_v14 }
 0x1a0   : > { %v540_v23 = vcombine.low %v516_v21, %v532_v19  ;;  %v541_v24 = vcombine.high %v516_v21, %v532_v19  ;;  %v556_v25 = vcombine.low %v523_v22, %v539_v20  ;;  %v557_v26 = vcombine.high %v523_v22, %v539_v20 }
 0x1a1   : > { %v652_v5 = vcombine.low %v495_v1, %v503_v3 }
 0x1a2   : > { %v548_v27 = vrot.slane %v540_v23, %v1838_v18  ;;  %v555_v28 = vrot.slane %v541_v24, %v1838_v18  ;;  %v564_v29 = vrot.slane %v556_v25, %v1838_v18  ;;  %v571_v30 = vrot.slane %v557_v26, %v1838_v18 }
 0x1a3   : > { %v659_v8 = vrot.slane %v652_v5, %v1835_v14 }
 0x1a4   : > { %v576_v31 = vcombine.low %v548_v27, %v555_v28  ;;  %v1037_v32 = vcombine.high %v548_v27, %v555_v28  ;;  %v592_v33 = vcombine.low %v564_v29, %v571_v30  ;;  %v1038_v34 = vcombine.high %v564_v29, %v571_v30 }
 0x1a5   : > { %v660_v9 = vcombine.low %v651_v6, %v659_v8  ;;  %v661_v11 = vcombine.high %v651_v6, %v659_v8 }
 0x1a6   : > { %v583_v35 = vrot.slane %v576_v31, %v1835_v14  ;;  %v591_v36 = vrot.slane %v1037_v32, %v1835_v14  ;;  %v599_v37 = vrot.slane %v592_v33, %v1835_v14  ;;  %v607_v38 = vrot.slane %v1038_v34, %v1835_v14 }
 0x1a7   : > { %v668_v10 = vrot.slane %v660_v9, %v1838_v18  ;;  %v675_v13 = vrot.slane %v661_v11, %v1838_v18 }
 0x1a8   : > { %v608_v39 = vcombine.low %v583_v35, %v591_v36  ;;  %v624_v40 = vcombine.low %v599_v37, %v607_v38  ;;  %v609_v41 = vcombine.high %v583_v35, %v591_v36  ;;  %v625_v42 = vcombine.high %v599_v37, %v607_v38 }
 0x1a9   : > { %v676_v12 = vcombine.high %v668_v10, %v1476_v56  ;;  %v677_v19 = vcombine.high %v675_v13, %v1476_v56 }
 0x1aa   : > { %v616_v43 = vrot.slane %v608_v39, %v1838_v18  ;;  %v632_v44 = vrot.slane %v624_v40, %v1838_v18  ;;  %v623_v45 = vrot.slane %v609_v41, %v1838_v18  ;;  %v639_v46 = vrot.slane %v625_v42, %v1838_v18 }
 0x1ac   : > { %v641_v47 = vcombine.high %v616_v43, %v632_v44  ;;  %v640_v48 = vcombine.low %v616_v43, %v632_v44  ;;  %v643_v49 = vcombine.high %v623_v45, %v639_v46  ;;  %v642_v50 = vcombine.low %v623_v45, %v639_v46 }
 0x1ae   : > { %682 = vmatprep.subr.mxu1 %v641_v47 }
 0x1af   : > { %683 = vmatpush1.msra.mxu1 %v640_v48 }
 0x1b0   : > { %1039 = vmatmul.mubr.msk.f32.vlgmr.msra.gmra.mrb[2].mxu1 %vm678_vm0, %v461_v51  ;;  %753 = vmatprep.subr.mxu1 %v643_v49 }
 0x1b1   : > { %754 = vmatpush1.msra.mxu1 %v642_v50  ;;  %817 = vmatprep.mubr.f32.mxu1 %v1476_v56 }
 0x1b4   : > { %1040 = vmatmul.mubr.msk.f32.vlgmr.msra.gmra.mrb[4].mxu1 %vm678_vm0, %v461_v51 }
 0x283   : > { %v748_v7 = vpop.f32.mrb[2].mxu1 }
 0x284   : > { %v749_v15 = vadd.f32 %v748_v7, %v668_v10  ;;  %v750_v16 = vpop.f32.mrb[3].mxu1 }
 0x285   : > { %v751_v17 = vadd.f32 %v750_v16, %v676_v12 }
 0x287   : > { %v819_v20 = vpop.f32.mrb[4].mxu1 }
 0x288   : > { %v820_v21 = vadd.f32 %v819_v20, %v675_v13  ;;  %v821_v22 = vpop.f32.mrb[5].mxu1 }
 0x289   : > { %v822_v23 = vadd.f32 %v821_v22, %v677_v19 }
 0x28a   : > { %v824_v24 = vcombine.low %v749_v15, %v820_v21 }
 0x28b   : > { %v832_v25 = vcombine.low %v751_v17, %v822_v23 }
 0x28c   : > { %v831_v26 = vrot.slane %v824_v24, %v1835_v14 }
 0x28d   : > { %v839_v27 = vrot.slane %v832_v25, %v1835_v14 }
 0x28f   : > { %v840_v28 = vcombine.low %v831_v26, %v839_v27  ;;  %v841_v29 = vcombine.high %v831_v26, %v839_v27 }
 0x291   : > { %v848_v30 = vrot.slane %v840_v28, %v1838_v18  ;;  %v855_v31 = vrot.slane %v841_v29, %v1838_v18  ;;  %1041 = vst.sshfl [vmem:[%s329_s18] sm:$0x55 pattern:$0x73516240] %v840_v28 }
 0x292   : > { %1042 = vst.sshfl [vmem:[%s329_s18 + $0x8] sm:$0x55 pattern:$0x73516240] %v841_v29 }
 0x293   : > { %v856_v14 = vcombine.high %v848_v30, %v1476_v56  ;;  %v857_v32 = vcombine.high %v855_v31, %v1476_v56 }
 0x295   : > { %859 = vst [vmem:[%s329_s18 + $0x4] sm:$0xf] %v856_v14  ;;  %861 = vst [vmem:[%s329_s18 + $0xc] sm:$0xf] %v857_v32 }
 0x296   : > { %1367 = shalt.err (!%p1364_p2)
}
 0x297   : > { %s1368_s2 = scalar_lea.hbm %s1882_s5, 256  ;;  %s1372_s13 = scalar_lea.hbm %s1990_s20, 768 }
 0x298   : > { %p1369_p4 = scmp.ne.s32.totalorder %s1882_s5, %s1368_s2  ;;  %p1373_p11 = scmp.lt.u32.totalorder %s1882_s5, %s1990_s20 }
 0x299   : > { %p1374_p6 = scmp.lt.u32.totalorder %s1372_s13, %s1368_s2  ;;  %p1376_p5 = scmp.lt.u32.totalorder %s1368_s2, %s1882_s5 }
 0x29a   : > { %p1370_p3 = pnand %p1369_p4, %p1991_p1 }
 0x29b   : > { %p1375_p0 = por %p1374_p6, %p1373_p11 }
 0x29c   : > { %p1371_p12 = pneg %p1370_p3 }
 0x29d   : > { %p1377_p8 = por %p1376_p5, %p1375_p0 }
 0x29f   : > { %p1378_p13 = pnand %p1377_p8, %p1371_p12 }
 0x2a1   : > { %1381 = shalt.err (!%p1378_p13)
}
 0x2a2   : > { %s1481_s10 = smov 64   ;;  %s1482_s25 = smov 4  }
 0x2a3   : > { %1151 = dma.vmem_to_hbm [thread:$0]  (%p1991_p1), %s1877_s17, 256, %s1882_s5, %s863_s8, %s1481_s10, %s1481_s10, %s1482_s25  }
 0x2a4 PF: > { %s1992_s15 = sld [smem:[#allocation18_spill]]  ;;  %s1993_s18 = sld [smem:[#allocation17_spill]] }
 0x2a5   : > { %s1994_s16 = sld [smem:[#allocation21_spill]] }
 0x2aa   : > { %p1170_p7 = scmp.ge.s32.totalorder %s1992_s15, 2  ;;  %s892_s6 = sand.u32 1, %s1993_s18  }
 0x2ab   : > { %p1995_p9 = scmp.ne.s32.totalorder %s1994_s16, 0  ;;  %s893_s22 = scalar_lea.sflag [#allocation6], %s892_s6 }
 0x2ad   : > { %p1166_p10 = pnand %p1170_p7, %p1995_p9 }
 0x2af   : > { %1429 = dma.done.wait (!%p1166_p10), %s893_s22, 256  }
 0x2b0   : > { %1431 = vsyncadd (!%p1166_p10), %s893_s22, 4294967040  ;;  %s28_s10 = sadd.s32 1, %s1992_s15   ;;  %s1996_s14 = sld [smem:[#allocation20_spill]] }
 0x2b1   : > { %p25_p2 = scmp.ge.s32.totalorder %s28_s10, 5   ;;  %s1997_s21 = sld [smem:[#allocation22_spill]] }
 0x2b2   : > { %s1998_s27 = sld [smem:[#allocation19_spill]]  ;;  %s1999_s28 = smov %s1438_s29 }
 0x2b3   : > { %s2000_s29 = smov %s1442_s30  ;;  %s2002_s6 = smov %s1450_s7 }
 0x2b4   : > { %s2003_s7 = smov %s1454_s0  ;;  %s2005_s8 = smov %s1462_s9 }
 0x2b5   :  { %27 = sbr.rel (!%p25_p2) target bundleno = 23 (0x17), region = 108 }
 0x2b6   : > { %s2001_s30 = smov %s1996_s14 }
 0x2b7   : > { %s2004_s0 = smov %s1997_s21 }
 0x2b8   : > { %s2006_s9 = smov %s1998_s27 }
 0x2bc   :  { %898 = vsyncpa [#allocation5], 1 }
 0x2bd   :  { %900 = vsyncpa [#allocation5 + $0x1], 1 }
 0x2be   :  { %901 = vsyncpa [#allocation8], 1 }
 0x2bf   :  { %903 = vsyncpa [#allocation8 + $0x1], 1 }
 0x2c0   :  { %904 = vsyncpa [#allocation6], 1 }
 0x2c1   :  { %906 = vsyncpa [#allocation6 + $0x1], 1 }

// kernel: tpu_custom_call.1
= control target key start
LH: loop header
LB: loop body
LE: loop exit
PB: predicated region body
PF: predicated region fallthrough
CT: control target
= control target key end

     0   :  { %s1806_s0 = inlined_call_operand.hbm [shape: s32[3], index: 0, kind: input, shape index: {}]   ;;  %s1807_s1 = inlined_call_operand.hbm [shape: f32[2,32,256], index: 1, kind: input, shape index: {}]   ;;  %s1808_s2 = inlined_call_operand.hbm [shape: f32[3,256,128], index: 2, kind: input, shape index: {}]   ;;  %s1809_s3 = inlined_call_operand.hbm [shape: f32[3,4,8], index: 3, kind: input, shape index: {}]   ;;  %s1810_s4 = inlined_call_operand.vmem [shape: f32[3,4,128], index: 4, kind: input, shape index: {}]   ;;  %s1811_s5 = inlined_call_operand.hbm [shape: f32[3,4,4,128], index: 5, kind: output, shape index: {}]  }
   0x1   :  { %1827 = sst [smem:[#allocation23_spill]] %s1808_s2  ;;  %s1153_s20 = scalar_lea.hbm %s1806_s0, 16 }
   0x2   :  { %1828 = sst [smem:[#allocation24_spill]] %s1811_s5  ;;  %p1154_p0 = scmp.ne.s32.totalorder %s1806_s0, %s1153_s20 }
   0x3   :  { %p1157_p1 = scmp.lt.u32.totalorder %s1153_s20, %s1806_s0 }
   0x5   :  { %p1159_p2 = pnand %p1157_p1, %p1154_p0 }
   0x7   :  { %1162 = shalt.err (!%p1159_p2)  }
   0x8   :  { %s1367_s25 = smov [#allocation3]  }
   0x9   :  { %11 = dma.hbm_to_smem %s1806_s0, 16, %s1367_s25, [#allocation2] }
   0xa   :  { %1317 = dma.done.wait [#allocation2], 16 }
   0xb   :  { %1318 = vsyncadd [#allocation2], 4294967280 }
   0xc   :  { %13 = sfence }
   0xd   :  { %14 = vsyncpa [#allocation5], 0 }
   0xe   :  { %16 = vsyncpa [#allocation5 + $0x1], 0 }
   0xf   :  { %17 = vsyncpa [#allocation8], 0 }
  0x10   :  { %19 = vsyncpa [#allocation8 + $0x1], 0 }
  0x11   :  { %20 = vsyncpa [#allocation6], 0 }
  0x12   :  { %22 = vsyncpa [#allocation6 + $0x1], 0  ;;  %s1422_s28 = smov 0   ;;  %s1424_s29 = smov 0  }
  0x13   :  { %s1426_s30 = smov 0   ;;  %s1428_s6 = smov 0  }
  0x14   :  { %s1430_s7 = smov 0   ;;  %s1432_s0 = smov 0  }
  0x15   :  { %s1434_s8 = smov 0   ;;  %s1436_s9 = smov 0  }
  0x16   :  { %s1438_s10 = smov 0  }
  0x17 LB: > { %1829 = sst [smem:[#allocation17_spill]] %s1333_s28  ;;  %s1468_s11 = sadd.s32 4294967295, %s1365_s10   ;;  %s1365_s10 = sphi %s1438_s10, %s28_s10   ;;  %s1361_s9 = sphi %s1436_s9, %s1871_s9   ;;  %s1357_s8 = sphi %s1434_s8, %s1870_s8   ;;  %s1353_s0 = sphi %s1432_s0, %s1869_s0   ;;  %s1349_s7 = sphi %s1430_s7, %s1868_s7   ;;  %s1345_s6 = sphi %s1428_s6, %s1867_s6   ;;  %s1341_s30 = sphi %s1426_s30, %s1866_s30   ;;  %s1337_s29 = sphi %s1424_s29, %s1865_s29   ;;  %s1333_s28 = sphi %s1422_s28, %s1864_s28  }
  0x18   : > { %1830 = sst [smem:[#allocation18_spill]] %s1365_s10  ;;  %s911_s12 = sadd.s32 4294967294, %s1365_s10  }
  0x19   : > { %s37_s13 = sadd.s32 1, %s1361_s9  ;;  %s1473_s14 = sld [smem:[#allocation3 + %s1361_s9]] }
  0x1a   : > { %p38_p3 = scmp.ge.s32.totalorder %s37_s13, 3  ;;  %p1816_p4 = scmp.eq.s32.totalorder %s1365_s10, 0 }
  0x1b   : > { %p1815_p5 = scmp.eq.s32.totalorder %s1468_s11, 0  ;;  %s77_s15 = sadd.s32 1, %s1341_s30 }
  0x1c   : > { %s1873_s13 = smov (%p38_p3, %s37_s13), 0  ;;  %p84_p6 = scmp.ne.s32.totalorder %s1341_s30, %s1337_s29 }
  0x1d   : > { %1831 = sst [smem:[#allocation19_spill]] %s1873_s13  ;;  %p90_p7 = scmp.ne.s32.totalorder %s1337_s29, %s1333_s28 }
  0x1e   : > { %s1485_s16 = sld [smem:[#allocation3 + %s1873_s13]]  ;;  %s74_s17 = ssub.s32 %s1361_s9, %s1873_s13 }
  0x1f   : > { %p75_p8 = scmp.eq.s32.totalorder %s74_s17, 0  ;;  %p1491_p9 = por %p84_p6, %p1816_p4 }
  0x20   : > { %p1497_p10 = por %p90_p7, %p1815_p5  ;;  %p168_p11 = scmp.eq.s32.totalorder %s1468_s11, 2 }
  0x21   : > { %s1503_s20 = scalar_select %p75_p8, %s1341_s30, %s77_s15  }
  0x22   : > { %s1833_s19 = scalar_select %p1497_p10, 1, 0 }
  0x23   : > { %1834 = sst [smem:[#allocation20_spill]] %s1503_s20  ;;  %p1505_p12 = por %p168_p11, %p84_p6 }
  0x24   : > { %p174_p13 = scmp.eq.s32.totalorder %s911_s12, 2  ;;  %p1814_p0 = scmp.lt.s32.totalorder %s1365_s10, 3 }
  0x25   : > { %s1835_s21 = scalar_select %p1505_p12, 1, 0 }
  0x26   : > { %p1510_p1 = por %p174_p13, %p90_p7  ;;  %s219_s23 = sand.u32 1, %s1365_s10  }
  0x27   : > { %s1813_s24 = sand.u32 1, %s1341_s30   ;;  %s938_s26 = sshll.u32 %s1361_s9, 12 }
  0x28   : > { %s1836_s22 = scalar_select %p1510_p1, 1, 0 }
  0x29   : > { %s917_s25 = sshll.u32 %s1813_s24, 8  ;;  %s1838_s2 = sld [smem:[#allocation23_spill]] }
  0x2a   : > { %1837 = sst [smem:[#allocation21_spill]] %s1836_s22  ;;  %s223_s12 = scalar_lea.vmem [#allocation7], %s917_s25 }
  0x2b   : > { %s230_s13 = sshll.u32 %s223_s12, 4  ;;  %p1528_p2 = pnand %p1814_p0, %p1491_p9  ;;  %s1532_s13 = int_to_ptr.vmem [resolvable:$true] %s230_s13 }
  0x2c   : > { %s1534_s24 = scalar_lea.sflag [#allocation8], %s219_s23 }
  0x2d   : > { %p1165_p6 = pneg %p1528_p2 }
  0x2f   : > { %s1522_s15 = scalar_lea.hbm %s1838_s2, %s938_s26  ;;  %s1168_s27 = scalar_lea.hbm %s1838_s2, 12288 }
  0x30   : > { %s1163_s26 = scalar_lea.hbm %s1522_s15, 4096  ;;  %p1169_p9 = scmp.lt.u32.totalorder %s1522_s15, %s1838_s2 }
  0x31   : > { %p1164_p3 = scmp.ne.s32.totalorder %s1522_s15, %s1163_s26  ;;  %p1170_p11 = scmp.lt.u32.totalorder %s1168_s27, %s1163_s26 }
  0x32   : > { %p1172_p0 = scmp.lt.u32.totalorder %s1163_s26, %s1522_s15 }
  0x33   : > { %p1166_p7 = pnand %p1165_p6, %p1164_p3  ;;  %p1171_p13 = por %p1170_p11, %p1169_p9 }
  0x35   : > { %p1167_p8 = pneg %p1166_p7  ;;  %p1173_p5 = por %p1172_p0, %p1171_p13 }
  0x37   : > { %p1174_p4 = pnand %p1173_p5, %p1167_p8 }
  0x39   : > { %1177 = shalt.err (!%p1174_p4)
}
  0x3a   : > { %s1178_s23 = scalar_lea.vmem %s1532_s13, 4096  ;;  %s1368_s18 = smov [#allocation7]  }
  0x3b   : > { %p1179_p3 = scmp.ne.s32.totalorder %s1532_s13, %s1178_s23  ;;  %s1183_s25 = sshll.u32 %s1368_s18, 4  ;;  %s1184_s25 = int_to_ptr.vmem [resolvable:$false] %s1183_s25 }
  0x3c   : > { %s1185_s17 = scalar_lea.vmem %s1184_s25, 8192  ;;  %p1186_p12 = scmp.lt.s32.totalorder %s1532_s13, %s1184_s25 }
  0x3d   : > { %p1181_p7 = pnand %p1179_p3, %p1165_p6  ;;  %p1187_p9 = scmp.lt.s32.totalorder %s1185_s17, %s1178_s23 }
  0x3f   : > { %p1182_p1 = pneg %p1181_p7  ;;  %p1188_p11 = por %p1187_p9, %p1186_p12 }
  0x41   : > { %p1189_p0 = pnand %p1188_p11, %p1182_p1 }
  0x43   : > { %1192 = shalt.err (!%p1189_p0)
}
  0x44   : > { %s1369_s26 = smov 128   ;;  %s1370_s27 = smov 8  }
  0x45   : > { %1062 = dma.hbm_to_vmem [thread:$0]  (!%p1528_p2), %s1522_s15, 4096, %s1532_s13, %s1534_s24, %s1369_s26, %s1369_s26, %s1370_s27  }
  0x46   : > { %p922_p4 = scmp.ge.s32.totalorder %s1365_s10, 1  ;;  %p263_p5 = scmp.lt.s32.totalorder %s1365_s10, 4 }
  0x47   : > { %s46_s23 = ssub.s32 %s1473_s14, %s1485_s16  ;;  %s51_s18 = sadd.s32 1, %s1353_s0 }
  0x48   : > { %p1564_p12 = pnand %p922_p4, %p263_p5  ;;  %p49_p1 = scmp.eq.s32.totalorder %s46_s23, 0 }
  0x49   : > { %p58_p8 = scmp.ne.s32.totalorder %s1353_s0, %s1349_s7  ;;  %p64_p13 = scmp.ne.s32.totalorder %s1349_s7, %s1345_s6 }
  0x4a   : > { %s1840_s12 = scalar_select %p1564_p12, 1, 0 }
  0x4b   : > { %s1576_s25 = scalar_select %p49_p1, %s1353_s0, %s51_s18  }
  0x4c   : > { %p1842_p3 = scmp.eq.s32.totalorder %s1365_s10, 0  ;;  %p1843_p9 = scmp.eq.s32.totalorder %s1468_s11, 0 }
  0x4d   : > { %1841 = sst [smem:[#allocation22_spill]] %s1576_s25  ;;  %s1818_s15 = sand.u32 1, %s1353_s0  }
  0x4e   : > { %p60_p7 = por %p1842_p3, %p58_p8  ;;  %p1582_p11 = por %p1843_p9, %p64_p13 }
  0x4f   : > { %s914_s17 = sshll.u32 %s1818_s15, 6  ;;  %p1845_p0 = scmp.lt.s32.totalorder %s1365_s10, 3 }
  0x50   : > { %s1844_s13 = scalar_select %p1582_p11, 1, 0 }
  0x51   : > { %p1591_p4 = pnand %p1845_p0, %p60_p7  ;;  %p1847_p5 = pmov %p1845_p0 }
  0x52   : > { %s1044_s16 = scalar_select %p60_p7, [#allocation3], [#allocation11] }
  0x53   : > { %s1846_s14 = scalar_select %p1591_p4, 1, 0 }
  0x54   : > { %s1045_s6 = scalar_select %p60_p7, %s1361_s9, 0 }
  0x55   : > { %s1875_s16 = smov (!%p1847_p5, %s1044_s16), [#allocation12]  ;;  %p1848_p1 = pmov %p1845_p0 }
  0x56   : > { %s198_s26 = scalar_lea.vmem [#allocation4], %s914_s17  ;;  %s1849_s18 = sand.u32 1, %s1341_s30  }
  0x57   : > { %s1877_s6 = smov (!%p1848_p1, %s1045_s6), 0  ;;  %s209_s27 = sshll.u32 %s198_s26, 4  ;;  %s1602_s27 = int_to_ptr.vmem [resolvable:$true] %s209_s27 }
  0x58   : > { %s1600_s23 = sld [smem:[%s1875_s16 + %s1877_s6]]  ;;  %s920_s15 = sshll.u32 %s1849_s18, 2 }
  0x59   : > { %s921_s2 = sshll.u32 %s1361_s9, 6  ;;  %s244_s10 = scalar_lea.vmem [#allocation9], %s920_s15 }
  0x5a   : > { %s1610_s28 = scalar_lea.hbm %s1809_s3, %s921_s2  ;;  %s251_s5 = sshll.u32 %s244_s10, 4  ;;  %s252_s5 = int_to_ptr.vmem [resolvable:$true] %s251_s5 }
  0x5b   : > { %s1193_s17 = scalar_lea.hbm %s1610_s28, 64  ;;  %s1198_s26 = scalar_lea.hbm %s1809_s3, 192 }
  0x5c   : > { %p1194_p8 = scmp.ne.s32.totalorder %s1610_s28, %s1193_s17  ;;  %p1199_p7 = scmp.lt.u32.totalorder %s1610_s28, %s1809_s3 }
  0x5d   : > { %p1200_p9 = scmp.lt.u32.totalorder %s1198_s26, %s1193_s17  ;;  %p1202_p5 = scmp.lt.u32.totalorder %s1193_s17, %s1610_s28 }
  0x5e   : > { %p1196_p13 = pnand %p1194_p8, %p1165_p6 }
  0x5f   : > { %p1201_p0 = por %p1200_p9, %p1199_p7 }
  0x60   : > { %p1197_p3 = pneg %p1196_p13 }
  0x61   : > { %p1203_p1 = por %p1202_p5, %p1201_p0 }
  0x63   : > { %p1204_p10 = pnand %p1203_p1, %p1197_p3 }
  0x65   : > { %1207 = shalt.err (!%p1204_p10)
}
  0x66   : > { %s1208_s10 = scalar_lea.vmem %s252_s5, 64  ;;  %s1371_s25 = smov [#allocation9]  }
  0x67   : > { %p1209_p11 = scmp.ne.s32.totalorder %s252_s5, %s1208_s10  ;;  %s1213_s15 = sshll.u32 %s1371_s25, 4  ;;  %s1214_s15 = int_to_ptr.vmem [resolvable:$false] %s1213_s15 }
  0x68   : > { %s1215_s18 = scalar_lea.vmem %s1214_s15, 128  ;;  %p1216_p12 = scmp.lt.s32.totalorder %s252_s5, %s1214_s15 }
  0x69   : > { %p1211_p8 = pnand %p1209_p11, %p1165_p6  ;;  %p1217_p4 = scmp.lt.s32.totalorder %s1215_s18, %s1208_s10 }
  0x6b   : > { %p1212_p13 = pneg %p1211_p8  ;;  %p1218_p7 = por %p1217_p4, %p1216_p12 }
  0x6d   : > { %p1219_p9 = pnand %p1218_p7, %p1212_p13 }
  0x6f   : > { %1222 = shalt.err (!%p1219_p9)
}
  0x70   : > { %1065 = dma.hbm_to_vmem [thread:$0]  (!%p1528_p2), %s1610_s28, 64, %s252_s5, %s1534_s24  }
  0x71   : > { %s937_s17 = sshll.u32 %s1600_s23, 10  ;;  %s1850_s22 = sand.u32 1, %s1353_s0  }
  0x72   : > { %s1636_s26 = scalar_lea.hbm %s1807_s1, %s937_s17  ;;  %s1640_s2 = scalar_lea.sflag [#allocation5], %s1850_s22 }
  0x73   : > { %s1223_s20 = scalar_lea.hbm %s1636_s26, 1024  ;;  %p1851_p6 = scmp.ne.s32.totalorder %s1846_s14, 0 }
  0x74   : > { %p1224_p10 = scmp.ne.s32.totalorder %s1636_s26, %s1223_s20  ;;  %s1228_s24 = scalar_lea.hbm %s1807_s1, 2048 }
  0x75   : > { %p1225_p12 = pneg %p1851_p6  ;;  %p1229_p4 = scmp.lt.u32.totalorder %s1636_s26, %s1807_s1 }
  0x76   : > { %p1230_p3 = scmp.lt.u32.totalorder %s1228_s24, %s1223_s20  ;;  %p1232_p5 = scmp.lt.u32.totalorder %s1223_s20, %s1636_s26 }
  0x77   : > { %p1226_p2 = pnand %p1225_p12, %p1224_p10 }
  0x78   : > { %p1231_p0 = por %p1230_p3, %p1229_p4 }
  0x79   : > { %p1227_p11 = pneg %p1226_p2 }
  0x7a   : > { %p1233_p1 = por %p1232_p5, %p1231_p0 }
  0x7c   : > { %p1234_p8 = pnand %p1233_p1, %p1227_p11 }
  0x7e   : > { %1237 = shalt.err (!%p1234_p8)
}
  0x7f   : > { %s1238_s25 = scalar_lea.vmem %s1602_s27, 1024  ;;  %s1372_s15 = smov [#allocation4]  }
  0x80   : > { %p1239_p13 = scmp.ne.s32.totalorder %s1602_s27, %s1238_s25  ;;  %s1243_s18 = sshll.u32 %s1372_s15, 4  ;;  %s1244_s18 = int_to_ptr.vmem [resolvable:$false] %s1243_s18 }
  0x81   : > { %s1245_s17 = scalar_lea.vmem %s1244_s18, 2048  ;;  %p1246_p10 = scmp.lt.s32.totalorder %s1602_s27, %s1244_s18 }
  0x82   : > { %p1241_p7 = pnand %p1239_p13, %p1225_p12  ;;  %p1247_p2 = scmp.lt.s32.totalorder %s1245_s17, %s1238_s25 }
  0x84   : > { %p1242_p9 = pneg %p1241_p7  ;;  %p1248_p4 = por %p1247_p2, %p1246_p10 }
  0x86   : > { %p1249_p3 = pnand %p1248_p4, %p1242_p9 }
  0x88   : > { %1252 = shalt.err (!%p1249_p3)
}
  0x89   : > { %s1373_s16 = smov 256   ;;  %s1374_s6 = smov 16  }
  0x8a   : > { %1059 = dma.hbm_to_vmem [thread:$0]  (!%p1851_p6), %s1636_s26, 1024, %s1602_s27, %s1640_s2, %s1373_s16, %s1373_s16, %s1374_s6  }
  0x8b   : > { %p1852_p12 = scmp.ne.s32.totalorder %s1840_s12, 0 }
  0x8c   : > { %s269_s22 = sand.u32 (!%p1852_p12), 1, %s1349_s7   ;;  %p1853_p11 = scmp.ne.s32.totalorder (!%p1852_p12), %s1844_s13, 0 }
  0x8d   : > { %267 = sbr.rel (%p1852_p12) target bundleno = 646 (0x286), region = 36  ;;  %s923_s20 = sshll.u32 (!%p1852_p12), %s269_s22, 6 }
  0x8e   : > { %s270_s5 = scalar_lea.sflag (!%p1852_p12), [#allocation5], %s269_s22  ;;  %s1671_s28 = scalar_lea.vmem (!%p1852_p12), [#allocation4], %s923_s20 }
  0x94   : > { %1320 = dma.done.wait (%p1853_p11), %s270_s5, 1024  }
  0x95   : > { %1322 = vsyncadd (%p1853_p11), %s270_s5, 4294966272  ;;  %s278_s14 = sand.u32 1, %s1468_s11   ;;  %s1679_s27 = sand.u32 1, %s1337_s29  }
  0x96   : > { %s924_s12 = sshll.u32 %s1679_s27, 8  ;;  %s279_s26 = scalar_lea.sflag [#allocation8], %s278_s14 }
  0x97   : > { %s1682_s2 = scalar_lea.vmem [#allocation7], %s924_s12  ;;  %p1854_p6 = scmp.ne.s32.totalorder %s1833_s19, 0 }
  0x99   : > { %1324 = dma.done.wait (%p1854_p6), %s279_s26, 4160  }
  0x9a   : > { %1326 = vsyncadd (%p1854_p6), %s279_s26, 4294963136  ;;  %v361_v0 = vld [vmem:[%s1682_s2 + $0x80] sm:$0xff]  ;;  %v362_v1 = vld [vmem:[%s1682_s2 + $0x88] sm:$0xff]  ;;  %v1375_v56 = vmov 0.0   ;;  %vm1376_vm0 = vmmov 0   ;;  %s925_s11 = sshll.u32 %s1679_s27, 2 }
  0x9b   : > { %v345_v2 = vld [vmem:[%s1682_s2] sm:$0xff]  ;;  %v1012_v3 = vpack.c.bf16 %v362_v1, %v361_v0  ;;  %v346_v4 = vld [vmem:[%s1682_s2 + $0x8] sm:$0xff]  ;;  %v363_v5 = vld [vmem:[%s1682_s2 + $0x90] sm:$0xff]  ;;  %992 = vmatprep.subr.mxu1 %v1375_v56  ;;  %994 = vmatprep.mubr.msk.f32.mxu1 %vm1376_vm0, %v1375_v56  ;;  %s291_s19 = scalar_lea.vmem [#allocation9], %s925_s11  ;;  %vm464_vm1 = vcmask 64512   ;;  %p332_p0 = scmp.lt.s32.totalorder %s1357_s8, 2 }
  0x9c   : > { %v364_v6 = vld [vmem:[%s1682_s2 + $0x98] sm:$0xff]  ;;  %v1014_v7 = vpack.c.bf16 %v346_v4, %v345_v2  ;;  %v347_v9 = vld [vmem:[%s1682_s2 + $0x10] sm:$0xff]  ;;  %v365_v11 = vld [vmem:[%s1682_s2 + $0xa0] sm:$0xff]  ;;  %s926_s15 = sshll.u32 %s1679_s27, 4  ;;  %s939_s16 = sshll.u32 %s1357_s8, 8 }
  0x9d   : > { %v1016_v8 = vpack.c.bf16 %v364_v6, %v363_v5  ;;  %v348_v10 = vld [vmem:[%s1682_s2 + $0x18] sm:$0xff]  ;;  %1013 = vmatprep.subr.bf16.mxu0 %v1012_v3  ;;  %v366_v12 = vld [vmem:[%s1682_s2 + $0xa8] sm:$0xff]  ;;  %v349_v15 = vld [vmem:[%s1682_s2 + $0x20] sm:$0xff]  ;;  %s333_s13 = scalar_select %p332_p0, %s1357_s8, 2 }
  0x9e   : > { %1015 = vmatpush3.bf16.msra.mxu0 %v1014_v7  ;;  %v1018_v13 = vpack.c.bf16 %v348_v10, %v347_v9  ;;  %v1020_v14 = vpack.c.bf16 %v366_v12, %v365_v11  ;;  %v350_v16 = vld [vmem:[%s1682_s2 + $0x28] sm:$0xff]  ;;  %v367_v17 = vld [vmem:[%s1682_s2 + $0xb0] sm:$0xff]  ;;  %v368_v18 = vld [vmem:[%s1682_s2 + $0xb8] sm:$0xff]  ;;  %s329_s18 = scalar_lea.vmem [#allocation10], %s926_s15  ;;  %s1855_s20 = sld [smem:[#allocation24_spill]] }
  0x9f   : > { %1017 = vmatprep.subr.bf16.mxu0 %v1016_v8  ;;  %v1022_v19 = vpack.c.bf16 %v350_v16, %v349_v15  ;;  %v1024_v20 = vpack.c.bf16 %v368_v18, %v367_v17  ;;  %v351_v21 = vld [vmem:[%s1682_s2 + $0x30] sm:$0xff]  ;;  %v352_v22 = vld [vmem:[%s1682_s2 + $0x38] sm:$0xff]  ;;  %v369_v23 = vld [vmem:[%s1682_s2 + $0xc0] sm:$0xff]  ;;  %s927_s24 = sshll.u32 %s333_s13, 2  ;;  %s768_s17 = sshll.u32 %s329_s18, 4  ;;  %s1744_s17 = int_to_ptr.vmem [resolvable:$true] %s768_s17 }
  0xa0   : > { %v370_v24 = vld [vmem:[%s1682_s2 + $0xc8] sm:$0xff]  ;;  %v1026_v26 = vpack.c.bf16 %v352_v22, %v351_v21  ;;  %v353_v28 = vld [vmem:[%s1682_s2 + $0x40] sm:$0xff]  ;;  %v371_v30 = vld [vmem:[%s1682_s2 + $0xd0] sm:$0xff]  ;;  %s335_s25 = scalar_lea.vmem %s1810_s4, %s927_s24  ;;  %s1253_s14 = scalar_lea.vmem %s1744_s17, 256 }
  0xa1   : > { %v338_v25 = vld [vmem:[%s1671_s28 + $0x8] sm:$0xff]  ;;  %v1028_v27 = vpack.c.bf16 %v370_v24, %v369_v23  ;;  %v372_v31 = vld [vmem:[%s1682_s2 + $0xd8] sm:$0xff]  ;;  %v355_v34 = vld [vmem:[%s1682_s2 + $0x50] sm:$0xff]  ;;  %p1254_p5 = scmp.ne.s32.totalorder %s1744_s17, %s1253_s14  ;;  %p1856_p1 = scmp.ne.s32.totalorder %s1835_s21, 0 }
  0xa2   : > { %1019 = vmatpush3.bf16.msra.mxu0 %v1018_v13  ;;  %441 = vmatprep.mubr.f32.mxu0 %v338_v25  ;;  %v354_v29 = vld [vmem:[%s1682_s2 + $0x48] sm:$0xff]  ;;  %v1032_v33 = vpack.c.bf16 %v372_v31, %v371_v30  ;;  %v356_v35 = vld [vmem:[%s1682_s2 + $0x58] sm:$0xff]  ;;  %v373_v36 = vld [vmem:[%s1682_s2 + $0xe0] sm:$0xff]  ;;  %s1377_s8 = smov [#allocation10]  }
  0xa3   : > { %1021 = vmatprep.subr.bf16.mxu0 %v1020_v14  ;;  %v1030_v32 = vpack.c.bf16 %v354_v29, %v353_v28  ;;  %v374_v37 = vld [vmem:[%s1682_s2 + $0xe8] sm:$0xff]  ;;  %v1034_v38 = vpack.c.bf16 %v356_v35, %v355_v34  ;;  %v357_v40 = vld [vmem:[%s1682_s2 + $0x60] sm:$0xff]  ;;  %v375_v42 = vld [vmem:[%s1682_s2 + $0xf0] sm:$0xff]  ;;  %p1255_p8 = pnand %p1254_p5, %p1856_p1  ;;  %s1257_s12 = sshll.u32 %s1377_s8, 4  ;;  %s1258_s12 = int_to_ptr.vmem [resolvable:$false] %s1257_s12 }
  0xa4   : > { %v1036_v39 = vpack.c.bf16 %v374_v37, %v373_v36  ;;  %v358_v41 = vld [vmem:[%s1682_s2 + $0x68] sm:$0xff]  ;;  %v376_v43 = vld [vmem:[%s1682_s2 + $0xf8] sm:$0xff]  ;;  %v359_v46 = vld [vmem:[%s1682_s2 + $0x70] sm:$0xff]  ;;  %s1749_s5 = scalar_lea.hbm %s1855_s20, %s939_s16  ;;  %s1259_s26 = scalar_lea.vmem %s1258_s12, 512 }
  0xa5   : > { %v1038_v44 = vpack.c.bf16 %v358_v41, %v357_v40  ;;  %v1040_v45 = vpack.c.bf16 %v376_v43, %v375_v42  ;;  %v360_v47 = vld [vmem:[%s1682_s2 + $0x78] sm:$0xff]  ;;  %v337_v49 = vld [vmem:[%s1671_s28] sm:$0xff]  ;;  %v339_v51 = vld [vmem:[%s1671_s28 + $0x10] sm:$0xff]  ;;  %p1256_p13 = pneg %p1255_p8  ;;  %p1260_p7 = scmp.lt.s32.totalorder %s1744_s17, %s1258_s12 }
  0xa6   : > { %1023 = vmatpush3.bf16.msra.mxu0 %v1022_v19  ;;  %v1042_v48 = vpack.c.bf16 %v360_v47, %v359_v46  ;;  %v340_v50 = vld [vmem:[%s1671_s28 + $0x18] sm:$0xff]  ;;  %v342_v52 = vld [vmem:[%s1671_s28 + $0x28] sm:$0xff]  ;;  %v341_v53 = vld [vmem:[%s1671_s28 + $0x20] sm:$0xff]  ;;  %p1261_p9 = scmp.lt.s32.totalorder %s1259_s26, %s1253_s14 }
  0xa7   : > { %1025 = vmatprep.subr.bf16.mxu0 %v1024_v20  ;;  %v344_v54 = vld [vmem:[%s1671_s28 + $0x38] sm:$0xff]  ;;  %v343_v55 = vld [vmem:[%s1671_s28 + $0x30] sm:$0xff]  ;;  %v462_v60 = vld [vmem:[%s291_s19] sm:$0xf]  ;;  %s753_s28 = scalar_lea.sflag [#allocation6], %s1679_s27 }
  0xa8   : > { %v463_v6 = vld [vmem:[%s335_s25] sm:$0xf]  ;;  %p1262_p10 = por %p1261_p9, %p1260_p7 }
  0xaa   : > { %1027 = vmatpush3.bf16.msra.mxu0 %v1026_v26  ;;  %p1263_p2 = pnand %p1262_p10, %p1256_p13 }
  0xab   : > { %1029 = vmatprep.subr.bf16.mxu0 %v1028_v27 }
  0xae   : > { %1031 = vmatpush3.bf16.msra.mxu0 %v1030_v32 }
  0xaf   : > { %1033 = vmatprep.subr.bf16.mxu0 %v1032_v33 }
  0xb2   : > { %1035 = vmatpush3.bf16.msra.mxu0 %v1034_v38 }
  0xb3   : > { %1037 = vmatprep.subr.bf16.mxu0 %v1036_v39 }
  0xb6   : > { %1039 = vmatpush3.bf16.msra.mxu0 %v1038_v44 }
  0xb7   : > { %1041 = vmatprep.subr.bf16.mxu0 %v1040_v45 }
  0xba   : > { %1043 = vmatpush3.bf16.msra.mxu0 %v1042_v48 }
  0xbd   : > { %442 = vmatmul.mubr.f32.vlgmr.msra.gmra.mrb[0].mxu0 %v337_v49 }
  0xbe   : > { %446 = vmatprep.mubr.f32.mxu0 %v340_v50 }
  0xc1   : > { %447 = vmatmul.mubr.f32.gmra.mrb[2].mxu0 %v339_v51 }
  0xc2   : > { %451 = vmatprep.mubr.f32.mxu0 %v342_v52 }
  0xc5   : > { %452 = vmatmul.mubr.f32.gmra.mrb[4].mxu0 %v341_v53 }
  0xc6   : > { %456 = vmatprep.mubr.f32.mxu0 %v344_v54 }
  0xc9   : > { %457 = vmatmul.mubr.f32.gmra.mrb[6].mxu0 %v343_v55 }
 0x190   : > { %v972_v57 = vpop.f32.mrb[0].mxu0 }
 0x191   : > { %v973_v58 = vpop.f32.mrb[1].mxu0 }
 0x192   : > { %v974_v59 = vadd.f32 %v973_v58, %v972_v57 }
 0x194   : > { %v975_v61 = vpop.f32.mrb[2].mxu0  ;;  %993 = vmatpush3.msra.mxu1 %v974_v59 }
 0x195   : > { %v976_v62 = vpop.f32.mrb[3].mxu0  ;;  %995 = vmatmul.mubr.msk.f32.vlgmr.msra.gmra.mrb[0].mxu1 %vm464_vm1, %v462_v60  ;;  %997 = vmatprep.subr.mxu1 %v1375_v56 }
 0x196   : > { %v977_v63 = vadd.f32 %v976_v62, %v975_v61  ;;  %999 = vmatprep.mubr.msk.f32.mxu1 %vm1376_vm0, %v1375_v56 }
 0x198   : > { %v978_v0 = vpop.f32.mrb[4].mxu0  ;;  %998 = vmatpush3.msra.mxu1 %v977_v63 }
 0x199   : > { %v979_v1 = vpop.f32.mrb[5].mxu0  ;;  %1000 = vmatmul.mubr.msk.f32.vlgmr.msra.gmra.mrb[2].mxu1 %vm464_vm1, %v462_v60  ;;  %1002 = vmatprep.subr.mxu1 %v1375_v56 }
 0x19a   : > { %v980_v2 = vadd.f32 %v979_v1, %v978_v0  ;;  %1004 = vmatprep.mubr.msk.f32.mxu1 %vm1376_vm0, %v1375_v56 }
 0x19c   : > { %v981_v3 = vpop.f32.mrb[6].mxu0  ;;  %1003 = vmatpush3.msra.mxu1 %v980_v2 }
 0x19d   : > { %v982_v4 = vpop.f32.mrb[7].mxu0  ;;  %1005 = vmatmul.mubr.msk.f32.vlgmr.msra.gmra.mrb[4].mxu1 %vm464_vm1, %v462_v60  ;;  %1007 = vmatprep.subr.mxu1 %v1375_v56 }
 0x19e   : > { %v983_v5 = vadd.f32 %v982_v4, %v981_v3  ;;  %1009 = vmatprep.mubr.msk.f32.mxu1 %vm1376_vm0, %v1375_v56 }
 0x1a0   : > { %1008 = vmatpush3.msra.mxu1 %v983_v5 }
 0x1a1   : > { %1010 = vmatmul.mubr.msk.f32.vlgmr.msra.gmra.mrb[6].mxu1 %vm464_vm1, %v462_v60 }
 0x268   : > { %v534_v7 = vpop.f32.mrb[0].mxu1 }
 0x269   : > { %v535_v8 = vadd.f32 %v534_v7, %v463_v6  ;;  %v996_v9 = vpop.f32.mrb[1].mxu1 }
 0x26b   : > { %748 = vst [vmem:[%s329_s18] sm:$0xf] %v535_v8 }
 0x26c   : > { %v604_v10 = vpop.f32.mrb[2].mxu1 }
 0x26d   : > { %v605_v11 = vadd.f32 %v604_v10, %v463_v6  ;;  %v1001_v12 = vpop.f32.mrb[3].mxu1 }
 0x26f   : > { %749 = vst [vmem:[%s329_s18 + $0x4] sm:$0xf] %v605_v11 }
 0x270   : > { %v674_v13 = vpop.f32.mrb[4].mxu1 }
 0x271   : > { %v675_v14 = vadd.f32 %v674_v13, %v463_v6  ;;  %v1006_v15 = vpop.f32.mrb[5].mxu1 }
 0x273   : > { %750 = vst [vmem:[%s329_s18 + $0x8] sm:$0xf] %v675_v14 }
 0x274   : > { %v744_v16 = vpop.f32.mrb[6].mxu1 }
 0x275   : > { %v745_v17 = vadd.f32 %v744_v16, %v463_v6  ;;  %v1011_v18 = vpop.f32.mrb[7].mxu1 }
 0x277   : > { %751 = vst [vmem:[%s329_s18 + $0xc] sm:$0xf] %v745_v17 }
 0x278   : > { %1266 = shalt.err (!%p1263_p2)
}
 0x279   : > { %s1267_s2 = scalar_lea.hbm %s1749_s5, 256  ;;  %s1271_s13 = scalar_lea.hbm %s1855_s20, 768 }
 0x27a   : > { %p1268_p4 = scmp.ne.s32.totalorder %s1749_s5, %s1267_s2  ;;  %p1272_p11 = scmp.lt.u32.totalorder %s1749_s5, %s1855_s20 }
 0x27b   : > { %p1273_p6 = scmp.lt.u32.totalorder %s1271_s13, %s1267_s2  ;;  %p1275_p5 = scmp.lt.u32.totalorder %s1267_s2, %s1749_s5 }
 0x27c   : > { %p1269_p3 = pnand %p1268_p4, %p1856_p1 }
 0x27d   : > { %p1274_p0 = por %p1273_p6, %p1272_p11 }
 0x27e   : > { %p1270_p12 = pneg %p1269_p3 }
 0x27f   : > { %p1276_p8 = por %p1275_p5, %p1274_p0 }
 0x281   : > { %p1277_p13 = pnand %p1276_p8, %p1270_p12 }
 0x283   : > { %1280 = shalt.err (!%p1277_p13)
}
 0x284   : > { %s1378_s10 = smov 64   ;;  %s1379_s25 = smov 4  }
 0x285   : > { %1052 = dma.vmem_to_hbm [thread:$0]  (%p1856_p1), %s1744_s17, 256, %s1749_s5, %s753_s28, %s1378_s10, %s1378_s10, %s1379_s25  }
 0x286 PF: > { %s1857_s15 = sld [smem:[#allocation18_spill]]  ;;  %s1858_s18 = sld [smem:[#allocation17_spill]] }
 0x287   : > { %s1859_s16 = sld [smem:[#allocation21_spill]] }
 0x28c   : > { %p1071_p7 = scmp.ge.s32.totalorder %s1857_s15, 2  ;;  %s783_s6 = sand.u32 1, %s1858_s18  }
 0x28d   : > { %p1860_p9 = scmp.ne.s32.totalorder %s1859_s16, 0  ;;  %s784_s22 = scalar_lea.sflag [#allocation6], %s783_s6 }
 0x28f   : > { %p1067_p10 = pnand %p1071_p7, %p1860_p9 }
 0x291   : > { %1328 = dma.done.wait (!%p1067_p10), %s784_s22, 256  }
 0x292   : > { %1330 = vsyncadd (!%p1067_p10), %s784_s22, 4294967040  ;;  %s28_s10 = sadd.s32 1, %s1857_s15   ;;  %s1861_s14 = sld [smem:[#allocation20_spill]] }
 0x293   : > { %p25_p2 = scmp.ge.s32.totalorder %s28_s10, 5   ;;  %s1862_s21 = sld [smem:[#allocation22_spill]] }
 0x294   : > { %s1863_s27 = sld [smem:[#allocation19_spill]]  ;;  %s1864_s28 = smov %s1337_s29 }
 0x295   : > { %s1865_s29 = smov %s1341_s30  ;;  %s1867_s6 = smov %s1349_s7 }
 0x296   : > { %s1868_s7 = smov %s1353_s0  ;;  %s1870_s8 = smov %s1361_s9 }
 0x297   :  { %27 = sbr.rel (!%p25_p2) target bundleno = 23 (0x17), region = 108 }
 0x298   : > { %s1866_s30 = smov %s1861_s14 }
 0x299   : > { %s1869_s0 = smov %s1862_s21 }
 0x29a   : > { %s1871_s9 = smov %s1863_s27 }
 0x29e   :  { %789 = vsyncpa [#allocation5], 1 }
 0x29f   :  { %791 = vsyncpa [#allocation5 + $0x1], 1 }
 0x2a0   :  { %792 = vsyncpa [#allocation8], 1 }
 0x2a1   :  { %794 = vsyncpa [#allocation8 + $0x1], 1 }
 0x2a2   :  { %795 = vsyncpa [#allocation6], 1 }
 0x2a3   :  { %797 = vsyncpa [#allocation6 + $0x1], 1 }

</bundles_post_ra>
